<compile_context>
chip_gen: v7x
topology: tpu7x:2x2x1
jax: 0.10.0
libtpu: 0.0.40
codegen_flags: <defaults>
</compile_context>

<pallas_src>
import jax
import jax.numpy as jnp
from jax.experimental import pallas as pl
from jax.experimental.pallas import tpu as pltpu

HIDDEN = 400          # module's hidden width
HIDDEN_PAD = 512      # lane-aligned padded hidden width (multiple of 128)
K_SPLIT = HIDDEN_PAD // 2   # fc2 weight streamed in two K-chunks
LANE = 128
BN_EPS = 1e-5


def _bn_fold(h, gamma, beta):
    """Training-mode BatchNorm1d folded to a per-feature (1, F) scale/shift.

    var = E[h^2] - mu^2 (single full-tensor mul feeding the reduction instead
    of a full-tensor subtract + square, and h is the only live full-tensor
    value); the mean is absorbed into the shift so the full-tensor apply is a
    single mul + add.  Padded features have gamma == beta == 0 -> scale ==
    shift == 0 -> they stay exactly 0.
    """
    mu = jnp.mean(h, axis=0, keepdims=True)
    ms = jnp.mean(h * h, axis=0, keepdims=True)
    var = jnp.maximum(ms - mu * mu, 0.0)         # biased variance, clamp cancellation
    scale = gamma * jax.lax.rsqrt(var + BN_EPS)  # (1, F) row math, EUP rsqrt
    shift = beta - mu * scale
    return scale, shift


def actor_kernel(x_ref,
                 w1_ref, g1_ref, be1_ref,
                 w2_hbm, g2_ref, be2_ref,
                 w3_hbm, b3_ref,
                 o_ref,
                 w2_buf, w3_buf, sem):
    # Stream fc2 (two K-chunks) and fc3 weights HBM->VMEM; the transfers
    # overlap fc1+bn1 compute, and chunk 1 additionally overlaps the first
    # partial fc2 matmul.
    cp_w2a = pltpu.make_async_copy(w2_hbm.at[0], w2_buf.at[0], sem.at[0])
    cp_w2b = pltpu.make_async_copy(w2_hbm.at[1], w2_buf.at[1], sem.at[1])
    cp_w3 = pltpu.make_async_copy(w3_hbm, w3_buf, sem.at[2])
    cp_w2a.start()
    cp_w2b.start()
    cp_w3.start()

    # fc1 (bias cancelled by BN) -> bn1 -> relu -> bf16 operand for fc2
    x = x_ref[...].astype(jnp.bfloat16)
    h1 = jnp.dot(x, w1_ref[...], preferred_element_type=jnp.float32)
    s1, t1 = _bn_fold(h1, g1_ref[...], be1_ref[...])
    a1 = jnp.maximum(h1 * s1 + t1, 0.0).astype(jnp.bfloat16)

    # fc2 (bias cancelled by BN), split-K: consume chunk 0 as soon as it
    # lands; chunk 1 keeps transferring under the first partial matmul.
    cp_w2a.wait()
    h2 = jnp.dot(a1[:, :K_SPLIT], w2_buf[0], preferred_element_type=jnp.float32)
    cp_w2b.wait()
    h2 = h2 + jnp.dot(a1[:, K_SPLIT:], w2_buf[1],
                      preferred_element_type=jnp.float32)
    s2, t2 = _bn_fold(h2, g2_ref[...], be2_ref[...])
    a2 = jnp.maximum(h2 * s2 + t2, 0.0).astype(jnp.bfloat16)

    # fc3 -> tanh (output is a lane-dense 128-wide padded slab)
    cp_w3.wait()
    y = jnp.dot(a2, w3_buf[...], preferred_element_type=jnp.float32) + b3_ref[...]
    o_ref[...] = jnp.tanh(y)


def _vmem_limit_bytes(batch, in_size, out_pad):
    """Scoped VMEM sized to resident weights + per-row activation footprint."""
    weights = (in_size * HIDDEN_PAD * 2          # w1 (bf16, resident input)
               + HIDDEN_PAD * HIDDEN_PAD * 2     # w2 landing scratch (bf16)
               + HIDDEN_PAD * out_pad * 2        # w3 landing scratch (bf16)
               + 8 * HIDDEN_PAD * 4)             # gamma/beta/b3 rows (f32)
    acts = batch * (in_size * 4 + out_pad * 4 + 6 * HIDDEN_PAD * 4)
    need = 2 * (weights + acts) + (1 << 20)      # 2x headroom + 1 MiB slack
    return int(min(max(need, 16 << 20), 64 << 20))   # floor 16 MiB, cap at v7x phys


def actor_forward(state, operands, out_size):
    """state: (B, input_size) float32.  operands: output of prepare_operands."""
    (w1, g1, be1, w2, g2, be2, w3, b3) = operands
    B, in_size = state.shape
    out_pad = w3.shape[1]

    vmem = pl.BlockSpec(memory_space=pltpu.MemorySpace.VMEM)
    hbm = pl.BlockSpec(memory_space=pl.ANY)      # manual DMA inside the kernel

    out = pl.pallas_call(
        actor_kernel,
        out_shape=jax.ShapeDtypeStruct((B, out_pad), jnp.float32),
        in_specs=[vmem,                   # x
                  vmem, vmem, vmem,       # w1, g1, be1
                  hbm, vmem, vmem,        # w2 (manual split-K DMA), g2, be2
                  hbm, vmem],             # w3 (manual DMA), b3
        out_specs=vmem,
        scratch_shapes=[
            pltpu.VMEM(w2.shape, w2.dtype),       # fc2 weight landing buffer (2,256,512)
            pltpu.VMEM(w3.shape, w3.dtype),       # fc3 weight landing buffer
            pltpu.SemaphoreType.DMA((3,)),        # w2 chunk0, w2 chunk1, w3
        ],
        compiler_params=pltpu.CompilerParams(
            vmem_limit_bytes=_vmem_limit_bytes(B, in_size, out_pad)),
    )(state, w1, g1, be1, w2, g2, be2, w3, b3)
    return out[:, :out_size]


def init_params(key, input_size, output_size):
    """Raw module-semantics parameters (PyTorch-style uniform fan-in init)."""
    ks = jax.random.split(key, 6)

    def lin(kw, kb, fan_in, fan_out):
        bound = 1.0 / jnp.sqrt(float(fan_in))
        w = jax.random.uniform(kw, (fan_in, fan_out), jnp.float32, -bound, bound)
        b = jax.random.uniform(kb, (1, fan_out), jnp.float32, -bound, bound)
        return w, b

    w1, b1 = lin(ks[0], ks[1], input_size, HIDDEN)
    w2, b2 = lin(ks[2], ks[3], HIDDEN, HIDDEN)
    w3, b3 = lin(ks[4], ks[5], HIDDEN, output_size)
    return {
        "w1": w1, "b1": b1,
        "g1": jnp.ones((1, HIDDEN), jnp.float32),
        "be1": jnp.zeros((1, HIDDEN), jnp.float32),
        "w2": w2, "b2": b2,
        "g2": jnp.ones((1, HIDDEN), jnp.float32),
        "be2": jnp.zeros((1, HIDDEN), jnp.float32),
        "w3": w3, "b3": b3,
    }


def prepare_operands(params):
    """One-time operand prep: drop BN-cancelled biases, zero-pad the hidden
    width 400 -> 512 and the output width to a multiple of 128 (both exact:
    padded gamma/beta/w-columns are 0), cast weights to bf16, and reshape w2
    to two K-chunks for the streamed in-kernel DMA.  BN gamma/beta stay f32."""
    out_size = params["w3"].shape[1]
    out_pad = max(LANE, ((out_size + LANE - 1) // LANE) * LANE)
    pad_h = HIDDEN_PAD - HIDDEN

    def pad_cols(a, n):
        return jnp.pad(a, ((0, 0), (0, n)))

    w1 = pad_cols(params["w1"], pad_h).astype(jnp.bfloat16)          # (in, 512)
    g1 = pad_cols(params["g1"], pad_h)                               # (1, 512)
    be1 = pad_cols(params["be1"], pad_h)
    w2 = jnp.pad(params["w2"], ((0, pad_h), (0, pad_h))).astype(jnp.bfloat16)
    w2 = w2.reshape(2, K_SPLIT, HIDDEN_PAD)                          # (2, 256, 512)
    g2 = pad_cols(params["g2"], pad_h)
    be2 = pad_cols(params["be2"], pad_h)
    w3 = jnp.pad(params["w3"],
                 ((0, pad_h), (0, out_pad - out_size))).astype(jnp.bfloat16)
    b3 = pad_cols(params["b3"], out_pad - out_size)
    return (w1, g1, be1, w2, g2, be2, w3, b3)


def reference_forward(state, p):
    """Exact f32 reference with the original module semantics (incl. b1/b2)."""
    h = state @ p["w1"] + p["b1"]
    mu = h.mean(0, keepdims=True)
    var = ((h - mu) ** 2).mean(0, keepdims=True)
    h = jnp.maximum((h - mu) / jnp.sqrt(var + BN_EPS) * p["g1"] + p["be1"], 0.0)
    h = h @ p["w2"] + p["b2"]
    mu = h.mean(0, keepdims=True)
    var = ((h - mu) ** 2).mean(0, keepdims=True)
    h = jnp.maximum((h - mu) / jnp.sqrt(var + BN_EPS) * p["g2"] + p["be2"], 0.0)
    return jnp.tanh(h @ p["w3"] + p["b3"])


def matched_reference(state, p):
    """Pure-JAX reference mirroring the kernel's numerics (bf16 matmul inputs,
    f32 accumulation, BN-cancelled biases, E[h^2]-mu^2 variance, folded
    scale/shift)."""
    def bn_relu(h, g, b):
        mu = h.mean(0, keepdims=True)
        ms = (h * h).mean(0, keepdims=True)
        var = jnp.maximum(ms - mu * mu, 0.0)
        scale = g * jax.lax.rsqrt(var + BN_EPS)
        shift = b - mu * scale
        return jnp.maximum(h * scale + shift, 0.0)

    h = jnp.dot(state.astype(jnp.bfloat16), p["w1"].astype(jnp.bfloat16),
                preferred_element_type=jnp.float32)
    h = bn_relu(h, p["g1"], p["be1"])
    h = jnp.dot(h.astype(jnp.bfloat16), p["w2"].astype(jnp.bfloat16),
                preferred_element_type=jnp.float32)
    h = bn_relu(h, p["g2"], p["be2"])
    y = jnp.dot(h.astype(jnp.bfloat16), p["w3"].astype(jnp.bfloat16),
                preferred_element_type=jnp.float32) + p["b3"]
    return jnp.tanh(y)


if __name__ == "__main__":
    key = jax.random.PRNGKey(0)
    k_state, k_params = jax.random.split(key)

    batch = 8
    input_size = 32
    output_size = 8

    state = jax.random.normal(k_state, (batch, input_size), jnp.float32)
    params = init_params(k_params, input_size, output_size)
    operands = prepare_operands(params)

    out = actor_forward(state, operands, output_size)
    out = jax.block_until_ready(out)
    assert out.shape == (batch, output_size)

    # Tight check against a pure-JAX reference with matching numerics
    # (bf16 matmul inputs + f32 accumulate, bias folded into BN, E[h^2]-mu^2).
    ref_matched = matched_reference(state, params)
    assert jnp.allclose(out, ref_matched, atol=2e-3, rtol=2e-3), \
        float(jnp.max(jnp.abs(out - ref_matched)))

    # Loose sanity check against the exact f32 module semantics: bf16 weight
    # rounding on a tanh-bounded output stays far inside this budget.
    ref_f32 = reference_forward(state, params)
    assert jnp.allclose(out, ref_f32, atol=1e-1), \
        float(jnp.max(jnp.abs(out - ref_f32)))

    print("KERNEL_OK")
</pallas_src>

<mosaic_0001>
module attributes {stable_mosaic.version = 11 : i64} {
  func.func @actor_kernel(%arg0: memref<8x32xf32, #tpu.memory_space<vmem>>, %arg1: memref<32x512xbf16, #tpu.memory_space<vmem>>, %arg2: memref<1x512xf32, #tpu.memory_space<vmem>>, %arg3: memref<1x512xf32, #tpu.memory_space<vmem>>, %arg4: memref<2x256x512xbf16, #tpu.memory_space<any>>, %arg5: memref<1x512xf32, #tpu.memory_space<vmem>>, %arg6: memref<1x512xf32, #tpu.memory_space<vmem>>, %arg7: memref<512x128xbf16, #tpu.memory_space<any>>, %arg8: memref<1x128xf32, #tpu.memory_space<vmem>>, %arg9: memref<8x128xf32, #tpu.memory_space<vmem>>, %arg10: memref<2x256x512xbf16, #tpu.memory_space<vmem>>, %arg11: memref<512x128xbf16, #tpu.memory_space<vmem>>, %arg12: memref<3x!tpu.dma_semaphore, #tpu.memory_space<semaphore_mem>>) attributes {dimension_semantics = [], scalar_prefetch = 0 : i64, scratch_operands = 3 : i64, tpu.core_type = #tpu.core_type<tc>} {
    %c0_i32 = arith.constant 0 : i32
    %c0_i32_0 = arith.constant 0 : i32
    %c0_i32_1 = arith.constant 0 : i32
    %c0_i32_2 = arith.constant 0 : i32
    %c0_i32_3 = arith.constant 0 : i32
    %0 = tpu.memref_slice %arg4[%c0_i32, %c0_i32_2, %c0_i32_3] : memref<2x256x512xbf16, #tpu.memory_space<any>> -> memref<1x256x512xbf16, #tpu.memory_space<any>>
    %1 = tpu.memref_squeeze %0 : memref<1x256x512xbf16, #tpu.memory_space<any>> -> memref<256x512xbf16, #tpu.memory_space<any>>
    %c0_i32_4 = arith.constant 0 : i32
    %c0_i32_5 = arith.constant 0 : i32
    %2 = tpu.memref_slice %arg10[%c0_i32_0, %c0_i32_4, %c0_i32_5] : memref<2x256x512xbf16, #tpu.memory_space<vmem>> -> memref<1x256x512xbf16, #tpu.memory_space<vmem>>
    %3 = tpu.memref_squeeze %2 : memref<1x256x512xbf16, #tpu.memory_space<vmem>> -> memref<256x512xbf16, #tpu.memory_space<vmem>>
    %4 = tpu.memref_slice %arg12[%c0_i32_1] : memref<3x!tpu.dma_semaphore, #tpu.memory_space<semaphore_mem>> -> memref<1x!tpu.dma_semaphore, #tpu.memory_space<semaphore_mem>>
    %5 = tpu.memref_squeeze %4 : memref<1x!tpu.dma_semaphore, #tpu.memory_space<semaphore_mem>> -> memref<!tpu.dma_semaphore, #tpu.memory_space<semaphore_mem>>
    tpu.enqueue_dma source(%1 : memref<256x512xbf16, #tpu.memory_space<any>>) target(%3 : memref<256x512xbf16, #tpu.memory_space<vmem>>) target_semaphore(%5 : memref<!tpu.dma_semaphore, #tpu.memory_space<semaphore_mem>>)
    %c1_i32 = arith.constant 1 : i32
    %c1_i32_6 = arith.constant 1 : i32
    %c1_i32_7 = arith.constant 1 : i32
    %c0_i32_8 = arith.constant 0 : i32
    %c0_i32_9 = arith.constant 0 : i32
    %6 = tpu.memref_slice %arg4[%c1_i32, %c0_i32_8, %c0_i32_9] : memref<2x256x512xbf16, #tpu.memory_space<any>> -> memref<1x256x512xbf16, #tpu.memory_space<any>>
    %7 = tpu.memref_squeeze %6 : memref<1x256x512xbf16, #tpu.memory_space<any>> -> memref<256x512xbf16, #tpu.memory_space<any>>
    %c0_i32_10 = arith.constant 0 : i32
    %c0_i32_11 = arith.constant 0 : i32
    %8 = tpu.memref_slice %arg10[%c1_i32_6, %c0_i32_10, %c0_i32_11] : memref<2x256x512xbf16, #tpu.memory_space<vmem>> -> memref<1x256x512xbf16, #tpu.memory_space<vmem>>
    %9 = tpu.memref_squeeze %8 : memref<1x256x512xbf16, #tpu.memory_space<vmem>> -> memref<256x512xbf16, #tpu.memory_space<vmem>>
    %10 = tpu.memref_slice %arg12[%c1_i32_7] : memref<3x!tpu.dma_semaphore, #tpu.memory_space<semaphore_mem>> -> memref<1x!tpu.dma_semaphore, #tpu.memory_space<semaphore_mem>>
    %11 = tpu.memref_squeeze %10 : memref<1x!tpu.dma_semaphore, #tpu.memory_space<semaphore_mem>> -> memref<!tpu.dma_semaphore, #tpu.memory_space<semaphore_mem>>
    tpu.enqueue_dma source(%7 : memref<256x512xbf16, #tpu.memory_space<any>>) target(%9 : memref<256x512xbf16, #tpu.memory_space<vmem>>) target_semaphore(%11 : memref<!tpu.dma_semaphore, #tpu.memory_space<semaphore_mem>>)
    %c2_i32 = arith.constant 2 : i32
    %12 = tpu.memref_slice %arg12[%c2_i32] : memref<3x!tpu.dma_semaphore, #tpu.memory_space<semaphore_mem>> -> memref<1x!tpu.dma_semaphore, #tpu.memory_space<semaphore_mem>>
    %13 = tpu.memref_squeeze %12 : memref<1x!tpu.dma_semaphore, #tpu.memory_space<semaphore_mem>> -> memref<!tpu.dma_semaphore, #tpu.memory_space<semaphore_mem>>
    tpu.enqueue_dma source(%arg7 : memref<512x128xbf16, #tpu.memory_space<any>>) target(%arg11 : memref<512x128xbf16, #tpu.memory_space<vmem>>) target_semaphore(%13 : memref<!tpu.dma_semaphore, #tpu.memory_space<semaphore_mem>>)
    %c0 = arith.constant 0 : index
    %c0_12 = arith.constant 0 : index
    %14 = vector.load %arg0[%c0, %c0_12] : memref<8x32xf32, #tpu.memory_space<vmem>>, vector<8x32xf32>
    %15 = arith.truncf %14 : vector<8x32xf32> to vector<8x32xbf16>
    %c0_13 = arith.constant 0 : index
    %c0_14 = arith.constant 0 : index
    %16 = vector.load %arg1[%c0_13, %c0_14] : memref<32x512xbf16, #tpu.memory_space<vmem>>, vector<32x512xbf16>
    %cst = arith.constant dense<0.000000e+00> : vector<8x512xf32>
    %17 = tpu.matmul %15, %16, %cst {dimension_numbers = #tpu.dot_dimension_numbers<[1], [0], [0], [1], [0, 0, 1, 1], [], []>} : vector<8x32xbf16>, vector<32x512xbf16>, vector<8x512xf32> -> vector<8x512xf32>
    %c0_15 = arith.constant 0 : index
    %c0_16 = arith.constant 0 : index
    %18 = vector.load %arg2[%c0_15, %c0_16] : memref<1x512xf32, #tpu.memory_space<vmem>>, vector<1x512xf32>
    %c0_17 = arith.constant 0 : index
    %c0_18 = arith.constant 0 : index
    %19 = vector.load %arg3[%c0_17, %c0_18] : memref<1x512xf32, #tpu.memory_space<vmem>>, vector<1x512xf32>
    %cst_19 = arith.constant dense<0.000000e+00> : vector<512xf32>
    %20 = vector.multi_reduction <add>, %17, %cst_19 [0] : vector<8x512xf32> to vector<512xf32>
    %21 = vector.shape_cast %20 : vector<512xf32> to vector<1x512xf32>
    %cst_20 = arith.constant 8.000000e+00 : f32
    %22 = vector.broadcast %cst_20 : f32 to vector<1x512xf32>
    %23 = arith.divf %21, %22 : vector<1x512xf32>
    %24 = arith.mulf %17, %17 : vector<8x512xf32>
    %cst_21 = arith.constant dense<0.000000e+00> : vector<512xf32>
    %25 = vector.multi_reduction <add>, %24, %cst_21 [0] : vector<8x512xf32> to vector<512xf32>
    %26 = vector.shape_cast %25 : vector<512xf32> to vector<1x512xf32>
    %cst_22 = arith.constant 8.000000e+00 : f32
    %27 = vector.broadcast %cst_22 : f32 to vector<1x512xf32>
    %28 = arith.divf %26, %27 : vector<1x512xf32>
    %29 = arith.mulf %23, %23 : vector<1x512xf32>
    %30 = arith.subf %28, %29 : vector<1x512xf32>
    %cst_23 = arith.constant 0.000000e+00 : f32
    %31 = vector.broadcast %cst_23 : f32 to vector<1x512xf32>
    %32 = arith.maximumf %30, %31 : vector<1x512xf32>
    %cst_24 = arith.constant 9.99999974E-6 : f32
    %33 = vector.broadcast %cst_24 : f32 to vector<1x512xf32>
    %34 = arith.addf %32, %33 : vector<1x512xf32>
    %35 = math.rsqrt %34 : vector<1x512xf32>
    %36 = arith.mulf %18, %35 : vector<1x512xf32>
    %37 = arith.mulf %23, %36 : vector<1x512xf32>
    %38 = arith.subf %19, %37 : vector<1x512xf32>
    %39 = vector.broadcast %36 : vector<1x512xf32> to vector<8x512xf32>
    %40 = arith.mulf %17, %39 : vector<8x512xf32>
    %41 = vector.broadcast %38 : vector<1x512xf32> to vector<8x512xf32>
    %42 = arith.addf %40, %41 : vector<8x512xf32>
    %cst_25 = arith.constant 0.000000e+00 : f32
    %43 = vector.broadcast %cst_25 : f32 to vector<8x512xf32>
    %44 = arith.maximumf %42, %43 : vector<8x512xf32>
    %45 = arith.truncf %44 : vector<8x512xf32> to vector<8x512xbf16>
    %c0_i32_26 = arith.constant 0 : i32
    %c0_i32_27 = arith.constant 0 : i32
    %c0_i32_28 = arith.constant 0 : i32
    %c0_i32_29 = arith.constant 0 : i32
    %c0_i32_30 = arith.constant 0 : i32
    %46 = tpu.memref_slice %arg4[%c0_i32_26, %c0_i32_29, %c0_i32_30] : memref<2x256x512xbf16, #tpu.memory_space<any>> -> memref<1x256x512xbf16, #tpu.memory_space<any>>
    %47 = tpu.memref_squeeze %46 : memref<1x256x512xbf16, #tpu.memory_space<any>> -> memref<256x512xbf16, #tpu.memory_space<any>>
    %c0_i32_31 = arith.constant 0 : i32
    %c0_i32_32 = arith.constant 0 : i32
    %48 = tpu.memref_slice %arg10[%c0_i32_27, %c0_i32_31, %c0_i32_32] : memref<2x256x512xbf16, #tpu.memory_space<vmem>> -> memref<1x256x512xbf16, #tpu.memory_space<vmem>>
    %49 = tpu.memref_squeeze %48 : memref<1x256x512xbf16, #tpu.memory_space<vmem>> -> memref<256x512xbf16, #tpu.memory_space<vmem>>
    %50 = tpu.memref_slice %arg12[%c0_i32_28] : memref<3x!tpu.dma_semaphore, #tpu.memory_space<semaphore_mem>> -> memref<1x!tpu.dma_semaphore, #tpu.memory_space<semaphore_mem>>
    %51 = tpu.memref_squeeze %50 : memref<1x!tpu.dma_semaphore, #tpu.memory_space<semaphore_mem>> -> memref<!tpu.dma_semaphore, #tpu.memory_space<semaphore_mem>>
    tpu.wait_dma2 semaphore(%51 : memref<!tpu.dma_semaphore, #tpu.memory_space<semaphore_mem>>) src(%47 : memref<256x512xbf16, #tpu.memory_space<any>>) dst(%49 : memref<256x512xbf16, #tpu.memory_space<vmem>>)
    %52 = vector.extract_strided_slice %45 {offsets = [0, 0], sizes = [8, 256], strides = [1, 1]} : vector<8x512xbf16> to vector<8x256xbf16>
    %c0_33 = arith.constant 0 : index
    %c0_34 = arith.constant 0 : index
    %c0_35 = arith.constant 0 : index
    %53 = vector.load %arg10[%c0_33, %c0_34, %c0_35] : memref<2x256x512xbf16, #tpu.memory_space<vmem>>, vector<1x256x512xbf16>
    %54 = vector.shape_cast %53 : vector<1x256x512xbf16> to vector<256x512xbf16>
    %cst_36 = arith.constant dense<0.000000e+00> : vector<8x512xf32>
    %55 = tpu.matmul %52, %54, %cst_36 {dimension_numbers = #tpu.dot_dimension_numbers<[1], [0], [0], [1], [0, 0, 1, 1], [], []>} : vector<8x256xbf16>, vector<256x512xbf16>, vector<8x512xf32> -> vector<8x512xf32>
    %c1_i32_37 = arith.constant 1 : i32
    %c1_i32_38 = arith.constant 1 : i32
    %c1_i32_39 = arith.constant 1 : i32
    %c0_i32_40 = arith.constant 0 : i32
    %c0_i32_41 = arith.constant 0 : i32
    %56 = tpu.memref_slice %arg4[%c1_i32_37, %c0_i32_40, %c0_i32_41] : memref<2x256x512xbf16, #tpu.memory_space<any>> -> memref<1x256x512xbf16, #tpu.memory_space<any>>
    %57 = tpu.memref_squeeze %56 : memref<1x256x512xbf16, #tpu.memory_space<any>> -> memref<256x512xbf16, #tpu.memory_space<any>>
    %c0_i32_42 = arith.constant 0 : i32
    %c0_i32_43 = arith.constant 0 : i32
    %58 = tpu.memref_slice %arg10[%c1_i32_38, %c0_i32_42, %c0_i32_43] : memref<2x256x512xbf16, #tpu.memory_space<vmem>> -> memref<1x256x512xbf16, #tpu.memory_space<vmem>>
    %59 = tpu.memref_squeeze %58 : memref<1x256x512xbf16, #tpu.memory_space<vmem>> -> memref<256x512xbf16, #tpu.memory_space<vmem>>
    %60 = tpu.memref_slice %arg12[%c1_i32_39] : memref<3x!tpu.dma_semaphore, #tpu.memory_space<semaphore_mem>> -> memref<1x!tpu.dma_semaphore, #tpu.memory_space<semaphore_mem>>
    %61 = tpu.memref_squeeze %60 : memref<1x!tpu.dma_semaphore, #tpu.memory_space<semaphore_mem>> -> memref<!tpu.dma_semaphore, #tpu.memory_space<semaphore_mem>>
    tpu.wait_dma2 semaphore(%61 : memref<!tpu.dma_semaphore, #tpu.memory_space<semaphore_mem>>) src(%57 : memref<256x512xbf16, #tpu.memory_space<any>>) dst(%59 : memref<256x512xbf16, #tpu.memory_space<vmem>>)
    %62 = vector.extract_strided_slice %45 {offsets = [0, 256], sizes = [8, 256], strides = [1, 1]} : vector<8x512xbf16> to vector<8x256xbf16>
    %c1 = arith.constant 1 : index
    %c0_44 = arith.constant 0 : index
    %c0_45 = arith.constant 0 : index
    %63 = vector.load %arg10[%c1, %c0_44, %c0_45] : memref<2x256x512xbf16, #tpu.memory_space<vmem>>, vector<1x256x512xbf16>
    %64 = vector.shape_cast %63 : vector<1x256x512xbf16> to vector<256x512xbf16>
    %cst_46 = arith.constant dense<0.000000e+00> : vector<8x512xf32>
    %65 = tpu.matmul %62, %64, %cst_46 {dimension_numbers = #tpu.dot_dimension_numbers<[1], [0], [0], [1], [0, 0, 1, 1], [], []>} : vector<8x256xbf16>, vector<256x512xbf16>, vector<8x512xf32> -> vector<8x512xf32>
    %66 = arith.addf %55, %65 : vector<8x512xf32>
    %c0_47 = arith.constant 0 : index
    %c0_48 = arith.constant 0 : index
    %67 = vector.load %arg5[%c0_47, %c0_48] : memref<1x512xf32, #tpu.memory_space<vmem>>, vector<1x512xf32>
    %c0_49 = arith.constant 0 : index
    %c0_50 = arith.constant 0 : index
    %68 = vector.load %arg6[%c0_49, %c0_50] : memref<1x512xf32, #tpu.memory_space<vmem>>, vector<1x512xf32>
    %cst_51 = arith.constant dense<0.000000e+00> : vector<512xf32>
    %69 = vector.multi_reduction <add>, %66, %cst_51 [0] : vector<8x512xf32> to vector<512xf32>
    %70 = vector.shape_cast %69 : vector<512xf32> to vector<1x512xf32>
    %cst_52 = arith.constant 8.000000e+00 : f32
    %71 = vector.broadcast %cst_52 : f32 to vector<1x512xf32>
    %72 = arith.divf %70, %71 : vector<1x512xf32>
    %73 = arith.mulf %66, %66 : vector<8x512xf32>
    %cst_53 = arith.constant dense<0.000000e+00> : vector<512xf32>
    %74 = vector.multi_reduction <add>, %73, %cst_53 [0] : vector<8x512xf32> to vector<512xf32>
    %75 = vector.shape_cast %74 : vector<512xf32> to vector<1x512xf32>
    %cst_54 = arith.constant 8.000000e+00 : f32
    %76 = vector.broadcast %cst_54 : f32 to vector<1x512xf32>
    %77 = arith.divf %75, %76 : vector<1x512xf32>
    %78 = arith.mulf %72, %72 : vector<1x512xf32>
    %79 = arith.subf %77, %78 : vector<1x512xf32>
    %cst_55 = arith.constant 0.000000e+00 : f32
    %80 = vector.broadcast %cst_55 : f32 to vector<1x512xf32>
    %81 = arith.maximumf %79, %80 : vector<1x512xf32>
    %cst_56 = arith.constant 9.99999974E-6 : f32
    %82 = vector.broadcast %cst_56 : f32 to vector<1x512xf32>
    %83 = arith.addf %81, %82 : vector<1x512xf32>
    %84 = math.rsqrt %83 : vector<1x512xf32>
    %85 = arith.mulf %67, %84 : vector<1x512xf32>
    %86 = arith.mulf %72, %85 : vector<1x512xf32>
    %87 = arith.subf %68, %86 : vector<1x512xf32>
    %88 = vector.broadcast %85 : vector<1x512xf32> to vector<8x512xf32>
    %89 = arith.mulf %66, %88 : vector<8x512xf32>
    %90 = vector.broadcast %87 : vector<1x512xf32> to vector<8x512xf32>
    %91 = arith.addf %89, %90 : vector<8x512xf32>
    %cst_57 = arith.constant 0.000000e+00 : f32
    %92 = vector.broadcast %cst_57 : f32 to vector<8x512xf32>
    %93 = arith.maximumf %91, %92 : vector<8x512xf32>
    %94 = arith.truncf %93 : vector<8x512xf32> to vector<8x512xbf16>
    %c2_i32_58 = arith.constant 2 : i32
    %95 = tpu.memref_slice %arg12[%c2_i32_58] : memref<3x!tpu.dma_semaphore, #tpu.memory_space<semaphore_mem>> -> memref<1x!tpu.dma_semaphore, #tpu.memory_space<semaphore_mem>>
    %96 = tpu.memref_squeeze %95 : memref<1x!tpu.dma_semaphore, #tpu.memory_space<semaphore_mem>> -> memref<!tpu.dma_semaphore, #tpu.memory_space<semaphore_mem>>
    tpu.wait_dma2 semaphore(%96 : memref<!tpu.dma_semaphore, #tpu.memory_space<semaphore_mem>>) src(%arg7 : memref<512x128xbf16, #tpu.memory_space<any>>) dst(%arg11 : memref<512x128xbf16, #tpu.memory_space<vmem>>)
    %c0_59 = arith.constant 0 : index
    %c0_60 = arith.constant 0 : index
    %97 = vector.load %arg11[%c0_59, %c0_60] : memref<512x128xbf16, #tpu.memory_space<vmem>>, vector<512x128xbf16>
    %cst_61 = arith.constant dense<0.000000e+00> : vector<8x128xf32>
    %98 = tpu.matmul %94, %97, %cst_61 {dimension_numbers = #tpu.dot_dimension_numbers<[1], [0], [0], [1], [0, 0, 1, 1], [], []>} : vector<8x512xbf16>, vector<512x128xbf16>, vector<8x128xf32> -> vector<8x128xf32>
    %c0_62 = arith.constant 0 : index
    %c0_63 = arith.constant 0 : index
    %99 = vector.load %arg8[%c0_62, %c0_63] : memref<1x128xf32, #tpu.memory_space<vmem>>, vector<1x128xf32>
    %100 = vector.broadcast %99 : vector<1x128xf32> to vector<8x128xf32>
    %101 = arith.addf %98, %100 : vector<8x128xf32>
    %102 = math.tanh %101 : vector<8x128xf32>
    %c0_64 = arith.constant 0 : index
    %c0_65 = arith.constant 0 : index
    %103 = vector.load %arg9[%c0_64, %c0_65] : memref<8x128xf32, #tpu.memory_space<vmem>>, vector<8x128xf32>
    tpu.vector_store %arg9[%c0_64, %c0_65], %102 {strides = array<i32>} : memref<8x128xf32, #tpu.memory_space<vmem>>, vector<8x128xf32>,
    return
  }
}

</mosaic_0001>

<bundles_post_ra>
// kernel: tpu_custom_call.1
= control target key start
LH: loop header
LB: loop body
LE: loop exit
PB: predicated region body
PF: predicated region fallthrough
CT: control target
= control target key end

     0   :  { %14 = vsyncpa [#allocation6], 0  ;;  %s1820_s0 = inlined_call_operand.hbm [shape: f32[8,32], index: 0, kind: input, shape index: {}]   ;;  %s1821_s1 = inlined_call_operand.hbm [shape: bf16[32,512], index: 1, kind: input, shape index: {}]   ;;  %s1822_s2 = inlined_call_operand.vmem [shape: f32[1,512], index: 2, kind: input, shape index: {}]   ;;  %s1823_s3 = inlined_call_operand.vmem [shape: f32[1,512], index: 3, kind: input, shape index: {}]   ;;  %s1824_s4 = inlined_call_operand.hbm [shape: bf16[2,256,512], index: 4, kind: input, shape index: {}]   ;;  %s1825_s5 = inlined_call_operand.vmem [shape: f32[1,512], index: 5, kind: input, shape index: {}]   ;;  %s1826_s6 = inlined_call_operand.vmem [shape: f32[1,512], index: 6, kind: input, shape index: {}]   ;;  %s1827_s7 = inlined_call_operand.hbm [shape: bf16[512,128], index: 7, kind: input, shape index: {}]   ;;  %s1828_s8 = inlined_call_operand.vmem [shape: f32[1,128], index: 8, kind: input, shape index: {}]   ;;  %s1829_s9 = inlined_call_operand.hbm [shape: f32[8,128], index: 9, kind: output, shape index: {}]  }
   0x1   :  { %15 = vsyncpa [#allocation9], 0 }
   0x2   :  { %16 = vsyncpa [#allocation7], 0  ;;  %s1363_s30 = smov [#allocation5]   ;;  %s1364_s11 = smov [#allocation8]  }
   0x3   :  { %s23_s10 = sshll.u32 %s1363_s30, 4  ;;  %s32_s12 = sshll.u32 %s1364_s11, 4  ;;  %s24_s10 = int_to_ptr.vmem [resolvable:$true] %s23_s10  ;;  %s1432_s12 = int_to_ptr.vmem [resolvable:$true] %s32_s12 }
   0x4   :  { %s1263_s15 = scalar_lea.hbm %s1820_s0, 128 }
   0x5   :  { %p1264_p0 = scmp.ne.s32.totalorder %s1820_s0, %s1263_s15  ;;  %p1267_p1 = scmp.lt.u32.totalorder %s1263_s15, %s1820_s0 }
   0x7   :  { %p1269_p2 = pnand %p1267_p1, %p1264_p0 }
   0x9   :  { %1272 = shalt.err (!%p1269_p2)
}
   0xa   :  { %s1273_s20 = scalar_lea.vmem %s24_s10, 128  ;;  %p1278_p4 = scmp.lt.s32.totalorder %s24_s10, %s24_s10 }
   0xb   :  { %p1274_p3 = scmp.ne.s32.totalorder %s24_s10, %s1273_s20  ;;  %p1279_p5 = scmp.lt.s32.totalorder %s1273_s20, %s1273_s20 }
   0xd   :  { %p1280_p6 = por %p1279_p5, %p1278_p4 }
   0xf   :  { %p1281_p7 = pnand %p1280_p6, %p1274_p3 }
  0x11   :  { %1284 = shalt.err (!%p1281_p7)
}
  0x12   :  { %26 = dma.hbm_to_vmem [thread:$0]  %s1820_s0, 128, %s24_s10, [#allocation6]  }
  0x13   :  { %s1285_s25 = scalar_lea.hbm %s1821_s1, 1024 }
  0x14   :  { %p1286_p8 = scmp.ne.s32.totalorder %s1821_s1, %s1285_s25  ;;  %p1289_p9 = scmp.lt.u32.totalorder %s1285_s25, %s1821_s1 }
  0x16   :  { %p1291_p10 = pnand %p1289_p9, %p1286_p8 }
  0x18   :  { %1294 = shalt.err (!%p1291_p10)
}
  0x19   :  { %s1295_s30 = scalar_lea.vmem %s1432_s12, 1024  ;;  %p1300_p12 = scmp.lt.s32.totalorder %s1432_s12, %s1432_s12 }
  0x1a   :  { %p1296_p11 = scmp.ne.s32.totalorder %s1432_s12, %s1295_s30  ;;  %p1301_p13 = scmp.lt.s32.totalorder %s1295_s30, %s1295_s30 }
  0x1c   :  { %p1302_p0 = por %p1301_p13, %p1300_p12 }
  0x1e   :  { %p1303_p1 = pnand %p1302_p0, %p1296_p11 }
  0x20   :  { %1306 = shalt.err (!%p1303_p1)
}
  0x21   :  { %s1365_s0 = smov 256   ;;  %s1366_s10 = smov 16  }
  0x22   :  { %38 = dma.hbm_to_vmem [thread:$0]  %s1821_s1, 1024, %s1432_s12, [#allocation9], %s1365_s0, %s1365_s0, %s1366_s10  }
  0x23   :  { %1351 = dma.done.wait [#allocation6], 128  }
  0x24   :  { %1352 = vsyncadd [#allocation6], 4294967168 }
  0x25   :  { %1353 = dma.done.wait [#allocation9], 1024  }
  0x26   :  { %1354 = vsyncadd [#allocation9], 4294966272  ;;  %s60_s14 = sld [smem:[#allocation0]]   ;;  %84 = sst [smem:[#allocation12 + $0x6]] %s1365_s0  ;;  %v1367_v0 = vmov 0   ;;  %vm190_vm0 = vcmask 261120  }
  0x27   :  { %226 = vmatprep.mubr.bf16.mxu0 %v1367_v0  ;;  %267 = vmatprep.mubr.bf16.mxu1 %v1367_v0  ;;  %s1368_s15 = smov [#allocation2]   ;;  %s1369_s17 = smov 512  }
  0x28   :  { %s68_s16 = sshll.u32 %s1368_s15, 4  ;;  %72 = sst [smem:[#allocation12]] %s1369_s17  ;;  %s69_s16 = int_to_ptr.vmem [resolvable:$true] %s68_s16 }
  0x29   :  { %74 = sst [smem:[#allocation12 + $0x1]] %s1369_s17  ;;  %s1370_s18 = smov 4  }
  0x2a   :  { %76 = sst [smem:[#allocation12 + $0x2]] %s1370_s18  ;;  %s1371_s19 = smov 64  }
  0x2b   :  { %78 = sst [smem:[#allocation12 + $0x3]] %s1371_s19  ;;  %s1372_s12 = smov 128  }
  0x2c   :  { %s1144_s1 = sshll.u32 %s60_s14, 26  ;;  %80 = sst [smem:[#allocation12 + $0x4]] %s1372_s12 }
  0x2d   :  { %s1145_s20 = sadd.s32 134217728, %s1144_s1  ;;  %s1373_s21 = smov 2  }
  0x2e   :  { %82 = sst [smem:[#allocation12 + $0x5]] %s1373_s21  ;;  %s1374_s22 = smov [#allocation4]  }
  0x2f   :  { %86 = sst [smem:[#allocation12 + $0x7]] %s1371_s19  ;;  %s1375_s23 = smov [#allocation11]  }
  0x30   :  { %88 = sst [smem:[#allocation12 + $0x8]] %s1370_s18  ;;  %s1376_s26 = smov [#allocation2 + $0x200]  }
  0x31   :  { %90 = dma.general %s1824_s4, 8192, %s69_s16, %s1374_s22, %s1375_s23, [#allocation12], %s1145_s20, 0  }
  0x32   :  { %109 = sst [smem:[#allocation14]] %s1369_s17  ;;  %s105_s27 = sshll.u32 %s1376_s26, 4  ;;  %s106_s27 = int_to_ptr.vmem [resolvable:$true] %s105_s27 }
  0x33   :  { %111 = sst [smem:[#allocation14 + $0x1]] %s1369_s17  ;;  %s91_s30 = scalar_lea.hbm %s1824_s4, 8192 }
  0x34   :  { %113 = sst [smem:[#allocation14 + $0x2]] %s1370_s18  ;;  %s1377_s10 = smov [#allocation4 + $0x1]  }
  0x35   :  { %115 = sst [smem:[#allocation14 + $0x3]] %s1371_s19  ;;  %s1378_s11 = smov [#allocation13]  }
  0x36   :  { %117 = sst [smem:[#allocation14 + $0x4]] %s1372_s12  ;;  %s1379_s4 = smov [#allocation3]  }
  0x37   :  { %119 = sst [smem:[#allocation14 + $0x5]] %s1373_s21  ;;  %s1307_s15 = scalar_lea.hbm %s1827_s7, 4096 }
  0x38   :  { %121 = sst [smem:[#allocation14 + $0x6]] %s1365_s0  ;;  %s136_s0 = sshll.u32 %s1379_s4, 4  ;;  %s137_s0 = int_to_ptr.vmem [resolvable:$true] %s136_s0 }
  0x39   :  { %123 = sst [smem:[#allocation14 + $0x7]] %s1371_s19  ;;  %p1308_p2 = scmp.ne.s32.totalorder %s1827_s7, %s1307_s15 }
  0x3a   :  { %125 = sst [smem:[#allocation14 + $0x8]] %s1370_s18  ;;  %p1311_p3 = scmp.lt.u32.totalorder %s1307_s15, %s1827_s7 }
  0x3b   :  { %127 = dma.general %s91_s30, 8192, %s106_s27, %s1377_s10, %s1378_s11, [#allocation14], %s1145_s20, 0  }
  0x3c   :  { %v1233_v1 = vld [vmem:[#allocation8 + $0x4] ss:$16 sps:$4 sm:$0xff]   ;;  %v1235_v2 = vld [vmem:[#allocation8 + $0xc] ss:$16 sps:$4 sm:$0xff]   ;;  %v1237_v3 = vld [vmem:[#allocation8] ss:$16 sps:$4 sm:$0xff]   ;;  %p1313_p4 = pnand %p1311_p3, %p1308_p2 }
  0x3d   :  { %194 = vmatprep.subr.bf16.mxu0 %v1233_v1  ;;  %v1238_v4 = vld [vmem:[#allocation8 + $0x8] ss:$16 sps:$4 sm:$0xff]   ;;  %235 = vmatprep.subr.bf16.mxu1 %v1235_v2  ;;  %v1239_v5 = vld [vmem:[#allocation8 + $0x24] ss:$16 sps:$4 sm:$0xff]   ;;  %v1241_v6 = vld [vmem:[#allocation8 + $0x2c] ss:$16 sps:$4 sm:$0xff]  }
  0x3e   :  { %195 = vmatpush1.bf16.msra.mxu0 %v1237_v3  ;;  %236 = vmatpush1.bf16.msra.mxu1 %v1238_v4  ;;  %v1243_v7 = vld [vmem:[#allocation8 + $0x20] ss:$16 sps:$4 sm:$0xff]   ;;  %v1244_v8 = vld [vmem:[#allocation8 + $0x28] ss:$16 sps:$4 sm:$0xff]  }
  0x3f   :  { %196 = vmatprep.subr.bf16.mxu0 %v1239_v5  ;;  %v140_v9 = vld [vmem:[#allocation5] sm:$0xff]  ;;  %237 = vmatprep.subr.bf16.mxu1 %v1241_v6 }
  0x40   :  { %v141_v10 = vpack.c.bf16 %v140_v9, %v140_v9 }
  0x42   :  { %197 = vmatpush1.bf16.msra.mxu0 %v1243_v7  ;;  %238 = vmatpush1.bf16.msra.mxu1 %v1244_v8 }
  0x45   :  { %1156 = vmatmul.mubr.msk.bf16.vlgmr.msra.gmra.mrb[0].mxu0 %vm190_vm0, %v141_v10  ;;  %1157 = vmatmul.mubr.msk.bf16.vlgmr.msra.gmra.mrb[0].mxu1 %vm190_vm0, %v141_v10 }
  0x46   :  { %1316 = shalt.err (!%p1313_p4)  }
  0x47   :  { %s1317_s1 = scalar_lea.vmem %s137_s0, 4096  ;;  %p1322_p6 = scmp.lt.s32.totalorder %s137_s0, %s137_s0 }
  0x48   :  { %p1318_p5 = scmp.ne.s32.totalorder %s137_s0, %s1317_s1  ;;  %p1323_p7 = scmp.lt.s32.totalorder %s1317_s1, %s1317_s1 }
  0x4a   :  { %p1324_p8 = por %p1323_p7, %p1322_p6 }
  0x4c   :  { %p1325_p9 = pnand %p1324_p8, %p1318_p5 }
  0x4e   :  { %1328 = shalt.err (!%p1325_p9)  }
  0x4f   :  { %139 = dma.hbm_to_vmem [thread:$0]  %s1827_s7, 4096, %s137_s0, [#allocation4 + $0x2] }
 0x118   :  { %v1485_v11 = vpop.f32.mrb[0].mxu0  ;;  %v1487_v12 = vpop.f32.mrb[0].mxu1 }
 0x119   :  { %v278_v13 = vrot.slane %v1485_v11, 4  ;;  %v307_v14 = vmul.f32 %v1485_v11, %v1485_v11  ;;  %v290_v15 = vrot.slane %v1487_v12, 4  ;;  %v309_v16 = vmul.f32 %v1487_v12, %v1487_v12  ;;  %v1495_v17 = vpop.f32.mrb[1].mxu0  ;;  %v1497_v18 = vpop.f32.mrb[1].mxu1 }
 0x11a   :  { %v284_v19 = vrot.slane %v1495_v17, 4  ;;  %v308_v20 = vmul.f32 %v1495_v17, %v1495_v17  ;;  %v296_v21 = vrot.slane %v1497_v18, 4  ;;  %v310_v22 = vmul.f32 %v1497_v18, %v1497_v18  ;;  %v232_v23 = vpop.f32.mrb[2].mxu0  ;;  %v273_v24 = vpop.f32.mrb[2].mxu1 }
 0x11b   :  { %v279_v25 = vadd.f32 %v278_v13, %v1485_v11  ;;  %v311_v26 = vrot.slane %v307_v14, 4  ;;  %v291_v27 = vadd.f32 %v290_v15, %v1487_v12  ;;  %v323_v28 = vrot.slane %v309_v16, 4  ;;  %v233_v29 = vpop.f32.mrb[3].mxu0  ;;  %v274_v30 = vpop.f32.mrb[3].mxu1 }
 0x11c   :  { %v285_v31 = vadd.f32 %v284_v19, %v1495_v17  ;;  %v317_v32 = vrot.slane %v308_v20, 4  ;;  %v297_v33 = vadd.f32 %v296_v21, %v1497_v18  ;;  %v329_v34 = vrot.slane %v310_v22, 4 }
 0x11d   :  { %v280_v35 = vrot.slane %v279_v25, 2  ;;  %v312_v36 = vadd.f32 %v311_v26, %v307_v14  ;;  %v292_v37 = vrot.slane %v291_v27, 2  ;;  %v324_v38 = vadd.f32 %v323_v28, %v309_v16 }
 0x11e   :  { %v286_v39 = vrot.slane %v285_v31, 2  ;;  %v318_v40 = vadd.f32 %v317_v32, %v308_v20  ;;  %v298_v41 = vrot.slane %v297_v33, 2  ;;  %v330_v42 = vadd.f32 %v329_v34, %v310_v22 }
 0x11f   :  { %v281_v43 = vadd.f32 %v280_v35, %v279_v25  ;;  %v313_v44 = vrot.slane %v312_v36, 2  ;;  %v293_v45 = vadd.f32 %v292_v37, %v291_v27  ;;  %v325_v46 = vrot.slane %v324_v38, 2 }
 0x120   :  { %v287_v47 = vadd.f32 %v286_v39, %v285_v31  ;;  %v319_v48 = vrot.slane %v318_v40, 2  ;;  %v299_v49 = vadd.f32 %v298_v41, %v297_v33  ;;  %v331_v50 = vrot.slane %v330_v42, 2 }
 0x121   :  { %v282_v51 = vrot.slane %v281_v43, 1  ;;  %v314_v52 = vadd.f32 %v313_v44, %v312_v36  ;;  %v294_v53 = vrot.slane %v293_v45, 1  ;;  %v326_v54 = vadd.f32 %v325_v46, %v324_v38 }
 0x122   :  { %v288_v55 = vrot.slane %v287_v47, 1  ;;  %v320_v56 = vadd.f32 %v319_v48, %v318_v40  ;;  %v300_v57 = vrot.slane %v299_v49, 1  ;;  %v332_v58 = vadd.f32 %v331_v50, %v330_v42  ;;  %v276_v50 = vld [vmem:[%s1822_s2] sm:$0xf] }
 0x123   :  { %v283_v59 = vadd.f32 %v282_v51, %v281_v43  ;;  %v315_v60 = vrot.slane %v314_v52, 1  ;;  %v295_v61 = vadd.f32 %v294_v53, %v293_v45  ;;  %v327_v62 = vrot.slane %v326_v54, 1 }
 0x124   :  { %v289_v63 = vadd.f32 %v288_v55, %v287_v47  ;;  %v321_v0 = vrot.slane %v320_v56, 1  ;;  %v301_v1 = vadd.f32 %v300_v57, %v299_v49  ;;  %v333_v2 = vrot.slane %v332_v58, 1 }
 0x125   :  { %v303_v3 = vmul.f32 0.125, %v283_v59  ;;  %v316_v4 = vadd.f32 %v315_v60, %v314_v52  ;;  %v305_v5 = vmul.f32 0.125, %v295_v61  ;;  %v328_v6 = vadd.f32 %v327_v62, %v326_v54 }
 0x126   :  { %v304_v7 = vmul.f32 0.125, %v289_v63  ;;  %v322_v8 = vadd.f32 %v321_v0, %v320_v56  ;;  %v306_v9 = vmul.f32 0.125, %v301_v1  ;;  %v334_v10 = vadd.f32 %v333_v2, %v332_v58 }
 0x127   :  { %v335_v13 = vmul.f32 0.125, %v316_v4  ;;  %v339_v14 = vmul.f32 %v303_v3, %v303_v3  ;;  %v337_v15 = vmul.f32 0.125, %v328_v6  ;;  %v341_v16 = vmul.f32 %v305_v5, %v305_v5 }
 0x128   :  { %v336_v19 = vmul.f32 0.125, %v322_v8  ;;  %v340_v20 = vmul.f32 %v304_v7, %v304_v7  ;;  %v338_v21 = vmul.f32 0.125, %v334_v10  ;;  %v342_v22 = vmul.f32 %v306_v9, %v306_v9 }
 0x129   :  { %v343_v23 = vsub.f32 %v335_v13, %v339_v14  ;;  %v345_v24 = vsub.f32 %v337_v15, %v341_v16  ;;  %v1380_v35 = vmov 1966171168   ;;  %v368_v37 = vlaneseq }
 0x12a   :  { %v344_v25 = vsub.f32 %v336_v19, %v340_v20  ;;  %v346_v26 = vsub.f32 %v338_v21, %v342_v22  ;;  %v366_v36 = vunpack.c.l.s4 %v1380_v35 }
 0x12b   :  { %v347_v27 = vmax.f32 %v343_v23, 0.0  ;;  %v349_v28 = vmax.f32 %v345_v24, 0.0  ;;  %v369_v39 = vshrl.u32 %v368_v37, 7 }
 0x12c   :  { %v348_v29 = vmax.f32 %v344_v25, 0.0  ;;  %v350_v30 = vmax.f32 %v346_v26, 0.0  ;;  %v367_v38 = vunpack.c.0.s8 %v366_v36 }
 0x12d   :  { %v351_v31 = vadd.f32 1e-05, %v347_v27  ;;  %v353_v32 = vadd.f32 1e-05, %v349_v28  ;;  %v1516_v51 = vsub.s32 0, %v369_v39  ;;  %v1519_v53 = vsub.s32 1, %v369_v39 }
 0x12e   :  { %v352_v33 = vadd.f32 1e-05, %v348_v29  ;;  %v354_v34 = vadd.f32 1e-05, %v350_v30  ;;  %v1509_v42 = vsub.s32 %v367_v38, %v369_v39  ;;  %v1521_v54 = vsub.s32 2, %v369_v39 }
 0x12f   :  { %1245 = vrsqrt.f32 %v351_v31  ;;  %1842 = vst [vmem:[#allocation26_spill] sm:$0xff] %v1516_v51  ;;  %1843 = vst [vmem:[#allocation27_spill] sm:$0xff] %v1519_v53  ;;  %v1523_v55 = vsub.s32 3, %v369_v39 }
 0x130   :  { %1247 = vrsqrt.f32 %v353_v32  ;;  %1841 = vst [vmem:[#allocation25_spill] sm:$0xff] %v1509_v42  ;;  %1844 = vst [vmem:[#allocation28_spill] sm:$0xff] %v1521_v54 }
 0x131   :  { %1249 = vrsqrt.f32 %v352_v33  ;;  %1845 = vst [vmem:[#allocation29_spill] sm:$0xff] %v1523_v55 }
 0x132   :  { %1251 = vrsqrt.f32 %v354_v34 }
 0x139   :  { %v1246_v40 = vpop.eup %1245 }
 0x13a   :  { %v1248_v41 = vpop.eup %1247 }
 0x13b   :  { %v1250_v43 = vpop.eup %1249 }
 0x13c   :  { %v1252_v44 = vpop.eup %1251  ;;  %v363_v45 = vcombine.low %v1246_v40, %v1250_v43 }
 0x13d   :  { %v364_v46 = vcombine.low %v1248_v41, %v1252_v44 }
 0x13e   :  { %v371_v47 = vrot.slane %v363_v45, %v1509_v42 }
 0x13f   :  { %v378_v48 = vrot.slane %v364_v46, %v1509_v42 }
 0x141   :  { %v379_v49 = vcombine.low %v371_v47, %v378_v48 }
 0x143   :  { %v386_v52 = vrot.slane %v379_v49, %v1509_v42 }
 0x145   :  { %v388_v56 = vmul.f32 %v386_v52, %v276_v50 }
 0x147   :  { %v393_v57 = vrot.slane %v388_v56, %v1516_v51  ;;  %v397_v58 = vrot.slane %v388_v56, %v1519_v53  ;;  %v401_v59 = vrot.slane %v388_v56, %v1521_v54  ;;  %v405_v60 = vrot.slane %v388_v56, %v1523_v55 }
 0x149   :  { %v410_v61 = vmul.f32 %v393_v57, %v303_v3  ;;  %v411_v62 = vmul.f32 %v397_v58, %v304_v7  ;;  %v412_v63 = vmul.f32 %v401_v59, %v305_v5  ;;  %v413_v0 = vmul.f32 %v405_v60, %v306_v9  ;;  %v277_v3 = vld [vmem:[%s1823_s3] sm:$0xf] }
 0x14a   :  { %v444_v1 = vmul.f32 %v393_v57, %v1485_v11  ;;  %v445_v2 = vmul.f32 %v397_v58, %v1495_v17  ;;  %v446_v4 = vmul.f32 %v401_v59, %v1487_v12  ;;  %v447_v6 = vmul.f32 %v405_v60, %v1497_v18 }
 0x14b   :  { %v418_v8 = vcombine.low %v410_v61, %v411_v62  ;;  %v419_v10 = vcombine.low %v412_v63, %v413_v0 }
 0x14d   :  { %v426_v13 = vrot.slane %v418_v8, %v1509_v42  ;;  %v433_v14 = vrot.slane %v419_v10, %v1509_v42 }
 0x14f   :  { %v434_v15 = vcombine.low %v426_v13, %v433_v14 }
 0x151   :  { %v441_v5 = vrot.slane %v434_v15, %v1509_v42 }
 0x153   :  { %v443_v11 = vsub.f32 %v277_v3, %v441_v5 }
 0x155   :  { %v452_v17 = vrot.slane %v443_v11, %v1516_v51  ;;  %v456_v12 = vrot.slane %v443_v11, %v1519_v53  ;;  %v460_v18 = vrot.slane %v443_v11, %v1521_v54  ;;  %v464_v7 = vrot.slane %v443_v11, %v1523_v55 }
 0x157   :  { %v469_v9 = vadd.f32 %v452_v17, %v444_v1  ;;  %v470_v16 = vadd.f32 %v456_v12, %v445_v2  ;;  %v471_v19 = vadd.f32 %v460_v18, %v446_v4  ;;  %v472_v20 = vadd.f32 %v464_v7, %v447_v6 }
 0x159   :  { %v473_v21 = vmax.f32 %v469_v9, 0.0  ;;  %v474_v22 = vmax.f32 %v470_v16, 0.0  ;;  %v475_v23 = vmax.f32 %v471_v19, 0.0  ;;  %v476_v24 = vmax.f32 %v472_v20, 0.0 }
 0x15b   :  { %v1543_v25 = vpack.c.bf16 %v473_v21, %v473_v21  ;;  %v1545_v26 = vpack.c.bf16 %v474_v22, %v474_v22  ;;  %v1547_v27 = vpack.c.bf16 %v475_v23, %v475_v23  ;;  %v1549_v28 = vpack.c.bf16 %v476_v24, %v476_v24 }
 0x15d   :  { %1846 = vst [vmem:[#allocation30_spill] sm:$0xff] %v1543_v25 }
 0x15e   :  { %1355 = dma.done.wait [#allocation4], 8192 }
 0x15f   :  { %1356 = vsyncadd [#allocation4], 4294959104  ;;  %v1551_v29 = vld [vmem:[#allocation2] sm:$0xff]  ;;  %v1553_v30 = vld [vmem:[#allocation2 + $0x8] sm:$0xff] }
 0x160   :  { %v1555_v31 = vld [vmem:[#allocation2 + $0x10] sm:$0xff]  ;;  %v1557_v32 = vld [vmem:[#allocation2 + $0x18] sm:$0xff]  ;;  %v1559_v33 = vld [vmem:[#allocation2 + $0x20] sm:$0xff] }
 0x161   :  { %v1561_v34 = vld [vmem:[#allocation2 + $0x28] sm:$0xff]  ;;  %v1563_v35 = vld [vmem:[#allocation2 + $0x30] sm:$0xff]  ;;  %v1565_v36 = vld [vmem:[#allocation2 + $0x38] sm:$0xff] }
 0x162   :  { %v1567_v37 = vld [vmem:[#allocation2 + $0x40] sm:$0xff]  ;;  %v1569_v38 = vld [vmem:[#allocation2 + $0x48] sm:$0xff]  ;;  %v1571_v39 = vld [vmem:[#allocation2 + $0x50] sm:$0xff] }
 0x163   :  { %v1573_v40 = vld [vmem:[#allocation2 + $0x58] sm:$0xff]  ;;  %v1575_v41 = vld [vmem:[#allocation2 + $0x60] sm:$0xff]  ;;  %v1577_v43 = vld [vmem:[#allocation2 + $0x68] sm:$0xff] }
 0x164   :  { %v1579_v44 = vld [vmem:[#allocation2 + $0x70] sm:$0xff]  ;;  %v1581_v45 = vld [vmem:[#allocation2 + $0x78] sm:$0xff]  ;;  %v1583_v46 = vld [vmem:[#allocation2 + $0x80] sm:$0xff] }
 0x165   :  { %v1585_v47 = vld [vmem:[#allocation2 + $0x88] sm:$0xff]  ;;  %v1587_v48 = vld [vmem:[#allocation2 + $0x90] sm:$0xff]  ;;  %v1589_v49 = vld [vmem:[#allocation2 + $0x98] sm:$0xff] }
 0x166   :  { %v1591_v50 = vld [vmem:[#allocation2 + $0xa0] sm:$0xff]  ;;  %v1593_v52 = vld [vmem:[#allocation2 + $0xa8] sm:$0xff]  ;;  %v1595_v56 = vld [vmem:[#allocation2 + $0xb0] sm:$0xff] }
 0x167   :  { %v1597_v57 = vld [vmem:[#allocation2 + $0xb8] sm:$0xff]  ;;  %v1599_v58 = vld [vmem:[#allocation2 + $0xc0] sm:$0xff]  ;;  %v1601_v59 = vld [vmem:[#allocation2 + $0xc8] sm:$0xff] }
 0x168   :  { %v1603_v60 = vld [vmem:[#allocation2 + $0xd0] sm:$0xff]  ;;  %v1605_v61 = vld [vmem:[#allocation2 + $0xd8] sm:$0xff]  ;;  %v1607_v62 = vld [vmem:[#allocation2 + $0xe0] sm:$0xff] }
 0x169   :  { %v1609_v63 = vld [vmem:[#allocation2 + $0xe8] sm:$0xff]  ;;  %v1611_v0 = vld [vmem:[#allocation2 + $0xf0] sm:$0xff]  ;;  %v1613_v1 = vld [vmem:[#allocation2 + $0xf8] sm:$0xff] }
 0x16a   :  { %v1615_v2 = vld [vmem:[#allocation2 + $0x100] sm:$0xff]  ;;  %v1617_v4 = vld [vmem:[#allocation2 + $0x108] sm:$0xff]  ;;  %v1619_v6 = vld [vmem:[#allocation2 + $0x110] sm:$0xff] }
 0x16b   :  { %v1621_v8 = vld [vmem:[#allocation2 + $0x118] sm:$0xff]  ;;  %v1623_v10 = vld [vmem:[#allocation2 + $0x120] sm:$0xff]  ;;  %v1625_v13 = vld [vmem:[#allocation2 + $0x128] sm:$0xff] }
 0x16c   :  { %v1627_v14 = vld [vmem:[#allocation2 + $0x130] sm:$0xff]  ;;  %v1629_v15 = vld [vmem:[#allocation2 + $0x138] sm:$0xff]  ;;  %v1631_v3 = vld [vmem:[#allocation2 + $0x140] sm:$0xff] }
 0x16d   :  { %v1633_v5 = vld [vmem:[#allocation2 + $0x148] sm:$0xff]  ;;  %v1635_v11 = vld [vmem:[#allocation2 + $0x150] sm:$0xff]  ;;  %v1637_v17 = vld [vmem:[#allocation2 + $0x158] sm:$0xff] }
 0x16e   :  { %v1639_v12 = vld [vmem:[#allocation2 + $0x160] sm:$0xff]  ;;  %v1641_v18 = vld [vmem:[#allocation2 + $0x168] sm:$0xff]  ;;  %v1643_v7 = vld [vmem:[#allocation2 + $0x170] sm:$0xff] }
 0x16f   :  { %v1645_v9 = vld [vmem:[#allocation2 + $0x178] sm:$0xff]  ;;  %v1647_v16 = vld [vmem:[#allocation2 + $0x180] sm:$0xff]  ;;  %v1649_v19 = vld [vmem:[#allocation2 + $0x188] sm:$0xff] }
 0x170   :  { %1847 = vst [vmem:[#allocation31_spill] sm:$0xff] %v1647_v16  ;;  %v1651_v20 = vld [vmem:[#allocation2 + $0x190] sm:$0xff]  ;;  %v1653_v21 = vld [vmem:[#allocation2 + $0x198] sm:$0xff]  ;;  %v1655_v22 = vld [vmem:[#allocation2 + $0x1a0] sm:$0xff] }
 0x171   :  { %1848 = vst [vmem:[#allocation32_spill] sm:$0xff] %v1651_v20  ;;  %1849 = vst [vmem:[#allocation33_spill] sm:$0xff] %v1653_v21  ;;  %v1657_v23 = vld [vmem:[#allocation2 + $0x1a8] sm:$0xff]  ;;  %v1659_v24 = vld [vmem:[#allocation2 + $0x1b0] sm:$0xff] }
 0x172   :  { %1850 = vst [vmem:[#allocation34_spill] sm:$0xff] %v1655_v22  ;;  %1851 = vst [vmem:[#allocation35_spill] sm:$0xff] %v1657_v23  ;;  %v1661_v55 = vld [vmem:[#allocation2 + $0x1b8] sm:$0xff]  ;;  %v1663_v54 = vld [vmem:[#allocation2 + $0x1c0] sm:$0xff] }
 0x173   :  { %1852 = vst [vmem:[#allocation36_spill] sm:$0xff] %v1659_v24  ;;  %1853 = vst [vmem:[#allocation37_spill] sm:$0xff] %v1661_v55  ;;  %v1665_v53 = vld [vmem:[#allocation2 + $0x1c8] sm:$0xff]  ;;  %v1667_v51 = vld [vmem:[#allocation2 + $0x1d0] sm:$0xff] }
 0x174   :  { %1854 = vst [vmem:[#allocation38_spill] sm:$0xff] %v1663_v54  ;;  %1855 = vst [vmem:[#allocation39_spill] sm:$0xff] %v1665_v53  ;;  %v1669_v42 = vld [vmem:[#allocation2 + $0x1d8] sm:$0xff]  ;;  %v1671_v25 = vld [vmem:[#allocation2 + $0x1e0] sm:$0xff] }
 0x175   :  { %1856 = vst [vmem:[#allocation40_spill] sm:$0xff] %v1667_v51  ;;  %1857 = vst [vmem:[#allocation41_spill] sm:$0xff] %v1669_v42  ;;  %v1673_v20 = vld [vmem:[#allocation2 + $0x1e8] sm:$0xff]  ;;  %v1675_v16 = vld [vmem:[#allocation2 + $0x1f0] sm:$0xff] }
 0x176   :  { %1858 = vst [vmem:[#allocation42_spill] sm:$0xff] %v1671_v25  ;;  %1859 = vst [vmem:[#allocation43_spill] sm:$0xff] %v1673_v20  ;;  %v1677_v22 = vld [vmem:[#allocation2 + $0x1f8] sm:$0xff] }
 0x177   :  { %1860 = vst [vmem:[#allocation44_spill] sm:$0xff] %v1675_v16  ;;  %1861 = vst [vmem:[#allocation45_spill] sm:$0xff] %v1677_v22 }
 0x178   :  { %1357 = dma.done.wait [#allocation4 + $0x1], 8192 }
 0x179   :  { %1358 = vsyncadd [#allocation4 + $0x1], 4294959104  ;;  %647 = vmatprep.mubr.bf16.mxu0 %v1549_v28  ;;  %688 = vmatprep.mubr.bf16.mxu1 %v1549_v28  ;;  %v552_v54 = vld [vmem:[#allocation2 + $0x208] sm:$0xff]  ;;  %v554_v53 = vld [vmem:[#allocation2 + $0x218] sm:$0xff] }
 0x17a   :  { %v551_v24 = vld [vmem:[#allocation2 + $0x200] sm:$0xff]  ;;  %615 = vmatprep.subr.bf16.mxu0 %v552_v54  ;;  %656 = vmatprep.subr.bf16.mxu1 %v554_v53  ;;  %v553_v51 = vld [vmem:[#allocation2 + $0x210] sm:$0xff]  ;;  %v556_v42 = vld [vmem:[#allocation2 + $0x228] sm:$0xff] }
 0x17b   :  { %v558_v25 = vld [vmem:[#allocation2 + $0x238] sm:$0xff]  ;;  %616 = vmatpush1.bf16.msra.mxu0 %v551_v24  ;;  %657 = vmatpush1.bf16.msra.mxu1 %v553_v51  ;;  %v555_v16 = vld [vmem:[#allocation2 + $0x220] sm:$0xff]  ;;  %v557_v22 = vld [vmem:[#allocation2 + $0x230] sm:$0xff] }
 0x17c   :  { %617 = vmatprep.subr.bf16.mxu0 %v556_v42  ;;  %658 = vmatprep.subr.bf16.mxu1 %v558_v25  ;;  %v560_v20 = vld [vmem:[#allocation2 + $0x248] sm:$0xff]  ;;  %v562_v55 = vld [vmem:[#allocation2 + $0x258] sm:$0xff]  ;;  %v559_v28 = vld [vmem:[#allocation2 + $0x240] sm:$0xff] }
 0x17d   :  { %v561_v23 = vld [vmem:[#allocation2 + $0x250] sm:$0xff]  ;;  %v564_v21 = vld [vmem:[#allocation2 + $0x268] sm:$0xff]  ;;  %v566_v54 = vld [vmem:[#allocation2 + $0x278] sm:$0xff] }
 0x17e   :  { %v563_v53 = vld [vmem:[#allocation2 + $0x260] sm:$0xff]  ;;  %v565_v51 = vld [vmem:[#allocation2 + $0x270] sm:$0xff]  ;;  %v568_v42 = vld [vmem:[#allocation2 + $0x288] sm:$0xff] }
 0x17f   :  { %618 = vmatpush1.bf16.msra.mxu0 %v555_v16  ;;  %659 = vmatpush1.bf16.msra.mxu1 %v557_v22  ;;  %v570_v25 = vld [vmem:[#allocation2 + $0x298] sm:$0xff]  ;;  %v567_v16 = vld [vmem:[#allocation2 + $0x280] sm:$0xff]  ;;  %v569_v22 = vld [vmem:[#allocation2 + $0x290] sm:$0xff] }
 0x180   :  { %619 = vmatprep.subr.bf16.mxu0 %v560_v20  ;;  %660 = vmatprep.subr.bf16.mxu1 %v562_v55  ;;  %v572_v20 = vld [vmem:[#allocation2 + $0x2a8] sm:$0xff]  ;;  %v574_v55 = vld [vmem:[#allocation2 + $0x2b8] sm:$0xff]  ;;  %v571_v24 = vld [vmem:[#allocation2 + $0x2a0] sm:$0xff] }
 0x183   :  { %620 = vmatpush1.bf16.msra.mxu0 %v559_v28  ;;  %661 = vmatpush1.bf16.msra.mxu1 %v561_v23  ;;  %v573_v23 = vld [vmem:[#allocation2 + $0x2b0] sm:$0xff]  ;;  %v578_v28 = vld [vmem:[#allocation2 + $0x2d8] sm:$0xff] }
 0x184   :  { %621 = vmatprep.subr.bf16.mxu0 %v564_v21  ;;  %662 = vmatprep.subr.bf16.mxu1 %v566_v54  ;;  %v576_v21 = vld [vmem:[#allocation2 + $0x2c8] sm:$0xff]  ;;  %v575_v54 = vld [vmem:[#allocation2 + $0x2c0] sm:$0xff] }
 0x187   :  { %622 = vmatpush1.bf16.msra.mxu0 %v563_v53  ;;  %663 = vmatpush1.bf16.msra.mxu1 %v565_v51  ;;  %v577_v53 = vld [vmem:[#allocation2 + $0x2d0] sm:$0xff]  ;;  %v580_v51 = vld [vmem:[#allocation2 + $0x2e8] sm:$0xff] }
 0x188   :  { %623 = vmatprep.subr.bf16.mxu0 %v568_v42  ;;  %664 = vmatprep.subr.bf16.mxu1 %v570_v25  ;;  %v582_v42 = vld [vmem:[#allocation2 + $0x2f8] sm:$0xff]  ;;  %v579_v25 = vld [vmem:[#allocation2 + $0x2e0] sm:$0xff] }
 0x18b   :  { %624 = vmatpush1.bf16.msra.mxu0 %v567_v16  ;;  %665 = vmatpush1.bf16.msra.mxu1 %v569_v22  ;;  %v581_v16 = vld [vmem:[#allocation2 + $0x2f0] sm:$0xff]  ;;  %v584_v22 = vld [vmem:[#allocation2 + $0x308] sm:$0xff] }
 0x18c   :  { %625 = vmatprep.subr.bf16.mxu0 %v572_v20  ;;  %666 = vmatprep.subr.bf16.mxu1 %v574_v55  ;;  %v586_v20 = vld [vmem:[#allocation2 + $0x318] sm:$0xff]  ;;  %v583_v55 = vld [vmem:[#allocation2 + $0x300] sm:$0xff] }
 0x18f   :  { %626 = vmatpush1.bf16.msra.mxu0 %v571_v24  ;;  %667 = vmatpush1.bf16.msra.mxu1 %v573_v23  ;;  %v585_v24 = vld [vmem:[#allocation2 + $0x310] sm:$0xff]  ;;  %v588_v23 = vld [vmem:[#allocation2 + $0x328] sm:$0xff] }
 0x190   :  { %627 = vmatprep.subr.bf16.mxu0 %v576_v21  ;;  %668 = vmatprep.subr.bf16.mxu1 %v578_v28  ;;  %v590_v21 = vld [vmem:[#allocation2 + $0x338] sm:$0xff]  ;;  %v587_v28 = vld [vmem:[#allocation2 + $0x320] sm:$0xff] }
 0x193   :  { %628 = vmatpush1.bf16.msra.mxu0 %v575_v54  ;;  %669 = vmatpush1.bf16.msra.mxu1 %v577_v53  ;;  %v589_v54 = vld [vmem:[#allocation2 + $0x330] sm:$0xff]  ;;  %v592_v53 = vld [vmem:[#allocation2 + $0x348] sm:$0xff] }
 0x194   :  { %629 = vmatprep.subr.bf16.mxu0 %v580_v51  ;;  %670 = vmatprep.subr.bf16.mxu1 %v582_v42  ;;  %v594_v51 = vld [vmem:[#allocation2 + $0x358] sm:$0xff]  ;;  %v591_v42 = vld [vmem:[#allocation2 + $0x340] sm:$0xff] }
 0x197   :  { %630 = vmatpush1.bf16.msra.mxu0 %v579_v25  ;;  %671 = vmatpush1.bf16.msra.mxu1 %v581_v16  ;;  %v593_v25 = vld [vmem:[#allocation2 + $0x350] sm:$0xff]  ;;  %v596_v16 = vld [vmem:[#allocation2 + $0x368] sm:$0xff] }
 0x198   :  { %631 = vmatprep.subr.bf16.mxu0 %v584_v22  ;;  %672 = vmatprep.subr.bf16.mxu1 %v586_v20  ;;  %v598_v22 = vld [vmem:[#allocation2 + $0x378] sm:$0xff]  ;;  %v595_v20 = vld [vmem:[#allocation2 + $0x360] sm:$0xff] }
 0x19b   :  { %632 = vmatpush1.bf16.msra.mxu0 %v583_v55  ;;  %673 = vmatpush1.bf16.msra.mxu1 %v585_v24  ;;  %v597_v55 = vld [vmem:[#allocation2 + $0x370] sm:$0xff]  ;;  %v600_v24 = vld [vmem:[#allocation2 + $0x388] sm:$0xff] }
 0x19c   :  { %633 = vmatprep.subr.bf16.mxu0 %v588_v23  ;;  %674 = vmatprep.subr.bf16.mxu1 %v590_v21  ;;  %v602_v23 = vld [vmem:[#allocation2 + $0x398] sm:$0xff]  ;;  %v599_v21 = vld [vmem:[#allocation2 + $0x380] sm:$0xff] }
 0x19f   :  { %634 = vmatpush1.bf16.msra.mxu0 %v587_v28  ;;  %675 = vmatpush1.bf16.msra.mxu1 %v589_v54  ;;  %v601_v28 = vld [vmem:[#allocation2 + $0x390] sm:$0xff]  ;;  %v604_v54 = vld [vmem:[#allocation2 + $0x3a8] sm:$0xff] }
 0x1a0   :  { %635 = vmatprep.subr.bf16.mxu0 %v592_v53  ;;  %676 = vmatprep.subr.bf16.mxu1 %v594_v51  ;;  %v606_v53 = vld [vmem:[#allocation2 + $0x3b8] sm:$0xff]  ;;  %v603_v51 = vld [vmem:[#allocation2 + $0x3a0] sm:$0xff] }
 0x1a3   :  { %636 = vmatpush1.bf16.msra.mxu0 %v591_v42  ;;  %677 = vmatpush1.bf16.msra.mxu1 %v593_v25  ;;  %v605_v42 = vld [vmem:[#allocation2 + $0x3b0] sm:$0xff]  ;;  %v608_v25 = vld [vmem:[#allocation2 + $0x3c8] sm:$0xff] }
 0x1a4   :  { %637 = vmatprep.subr.bf16.mxu0 %v596_v16  ;;  %678 = vmatprep.subr.bf16.mxu1 %v598_v22  ;;  %v610_v16 = vld [vmem:[#allocation2 + $0x3d8] sm:$0xff]  ;;  %v607_v22 = vld [vmem:[#allocation2 + $0x3c0] sm:$0xff] }
 0x1a7   :  { %638 = vmatpush1.bf16.msra.mxu0 %v595_v20  ;;  %679 = vmatpush1.bf16.msra.mxu1 %v597_v55  ;;  %v609_v20 = vld [vmem:[#allocation2 + $0x3d0] sm:$0xff]  ;;  %v612_v55 = vld [vmem:[#allocation2 + $0x3e8] sm:$0xff] }
 0x1a8   :  { %639 = vmatprep.subr.bf16.mxu0 %v600_v24  ;;  %680 = vmatprep.subr.bf16.mxu1 %v602_v23  ;;  %v614_v24 = vld [vmem:[#allocation2 + $0x3f8] sm:$0xff]  ;;  %v611_v23 = vld [vmem:[#allocation2 + $0x3e0] sm:$0xff] }
 0x1ab   :  { %640 = vmatpush1.bf16.msra.mxu0 %v599_v21  ;;  %681 = vmatpush1.bf16.msra.mxu1 %v601_v28  ;;  %v613_v21 = vld [vmem:[#allocation2 + $0x3f0] sm:$0xff] }
 0x1ac   :  { %641 = vmatprep.subr.bf16.mxu0 %v604_v54  ;;  %682 = vmatprep.subr.bf16.mxu1 %v606_v53 }
 0x1af   :  { %642 = vmatpush1.bf16.msra.mxu0 %v603_v51  ;;  %683 = vmatpush1.bf16.msra.mxu1 %v605_v42 }
 0x1b0   :  { %643 = vmatprep.subr.bf16.mxu0 %v608_v25  ;;  %684 = vmatprep.subr.bf16.mxu1 %v610_v16 }
 0x1b3   :  { %644 = vmatpush1.bf16.msra.mxu0 %v607_v22  ;;  %685 = vmatpush1.bf16.msra.mxu1 %v609_v20 }
 0x1b4   :  { %645 = vmatprep.subr.bf16.mxu0 %v612_v55  ;;  %686 = vmatprep.subr.bf16.mxu1 %v614_v24 }
 0x1b7   :  { %646 = vmatpush1.bf16.msra.mxu0 %v611_v23  ;;  %687 = vmatpush1.bf16.msra.mxu1 %v613_v21 }
 0x1b8   :  { %697 = vmatprep.subr.bf16.mxu0 %v1553_v30  ;;  %738 = vmatprep.subr.bf16.mxu1 %v1557_v32  ;;  %v1865_v30 = vld [vmem:[#allocation35_spill] sm:$0xff]  ;;  %v1867_v32 = vld [vmem:[#allocation34_spill] sm:$0xff] }
 0x1ba   :  { %648 = vmatmul.mubr.bf16.vlgmr.msra.gmra.mrb[4].mxu0 %v1547_v27  ;;  %689 = vmatmul.mubr.bf16.vlgmr.msra.gmra.mrb[4].mxu1 %v1547_v27  ;;  %v1863_v27 = vld [vmem:[#allocation31_spill] sm:$0xff] }
 0x1bb   :  { %698 = vmatpush1.bf16.msra.mxu0 %v1551_v29  ;;  %739 = vmatpush1.bf16.msra.mxu1 %v1555_v31  ;;  %v1864_v29 = vld [vmem:[#allocation32_spill] sm:$0xff]  ;;  %v1866_v31 = vld [vmem:[#allocation37_spill] sm:$0xff] }
 0x1bc   :  { %699 = vmatprep.subr.bf16.mxu0 %v1561_v34  ;;  %740 = vmatprep.subr.bf16.mxu1 %v1565_v36  ;;  %v1869_v34 = vld [vmem:[#allocation39_spill] sm:$0xff]  ;;  %v1871_v36 = vld [vmem:[#allocation38_spill] sm:$0xff] }
 0x1bd   :  { %729 = vmatprep.mubr.bf16.mxu0 %v1545_v26  ;;  %770 = vmatprep.mubr.bf16.mxu1 %v1545_v26  ;;  %v1862_v26 = vld [vmem:[#allocation33_spill] sm:$0xff] }
 0x1bf   :  { %700 = vmatpush1.bf16.msra.mxu0 %v1559_v33  ;;  %741 = vmatpush1.bf16.msra.mxu1 %v1563_v35  ;;  %v1868_v33 = vld [vmem:[#allocation36_spill] sm:$0xff]  ;;  %v1870_v35 = vld [vmem:[#allocation41_spill] sm:$0xff] }
 0x1c0   :  { %701 = vmatprep.subr.bf16.mxu0 %v1569_v38  ;;  %742 = vmatprep.subr.bf16.mxu1 %v1573_v40  ;;  %v1873_v38 = vld [vmem:[#allocation43_spill] sm:$0xff]  ;;  %v1875_v40 = vld [vmem:[#allocation42_spill] sm:$0xff] }
 0x1c3   :  { %702 = vmatpush1.bf16.msra.mxu0 %v1567_v37  ;;  %743 = vmatpush1.bf16.msra.mxu1 %v1571_v39  ;;  %v1872_v37 = vld [vmem:[#allocation40_spill] sm:$0xff]  ;;  %v1874_v39 = vld [vmem:[#allocation45_spill] sm:$0xff] }
 0x1c4   :  { %703 = vmatprep.subr.bf16.mxu0 %v1577_v43  ;;  %744 = vmatprep.subr.bf16.mxu1 %v1581_v45  ;;  %v1877_v43 = vld [vmem:[#allocation30_spill] sm:$0xff] }
 0x1c7   :  { %704 = vmatpush1.bf16.msra.mxu0 %v1575_v41  ;;  %745 = vmatpush1.bf16.msra.mxu1 %v1579_v44  ;;  %v1876_v41 = vld [vmem:[#allocation44_spill] sm:$0xff] }
 0x1c8   :  { %705 = vmatprep.subr.bf16.mxu0 %v1585_v47  ;;  %746 = vmatprep.subr.bf16.mxu1 %v1589_v49 }
 0x1cb   :  { %706 = vmatpush1.bf16.msra.mxu0 %v1583_v46  ;;  %747 = vmatpush1.bf16.msra.mxu1 %v1587_v48 }
 0x1cc   :  { %707 = vmatprep.subr.bf16.mxu0 %v1593_v52  ;;  %748 = vmatprep.subr.bf16.mxu1 %v1597_v57 }
 0x1cf   :  { %708 = vmatpush1.bf16.msra.mxu0 %v1591_v50  ;;  %749 = vmatpush1.bf16.msra.mxu1 %v1595_v56 }
 0x1d0   :  { %709 = vmatprep.subr.bf16.mxu0 %v1601_v59  ;;  %750 = vmatprep.subr.bf16.mxu1 %v1605_v61 }
 0x1d3   :  { %710 = vmatpush1.bf16.msra.mxu0 %v1599_v58  ;;  %751 = vmatpush1.bf16.msra.mxu1 %v1603_v60 }
 0x1d4   :  { %711 = vmatprep.subr.bf16.mxu0 %v1609_v63  ;;  %752 = vmatprep.subr.bf16.mxu1 %v1613_v1 }
 0x1d7   :  { %712 = vmatpush1.bf16.msra.mxu0 %v1607_v62  ;;  %753 = vmatpush1.bf16.msra.mxu1 %v1611_v0 }
 0x1d8   :  { %713 = vmatprep.subr.bf16.mxu0 %v1617_v4  ;;  %754 = vmatprep.subr.bf16.mxu1 %v1621_v8 }
 0x1db   :  { %714 = vmatpush1.bf16.msra.mxu0 %v1615_v2  ;;  %755 = vmatpush1.bf16.msra.mxu1 %v1619_v6 }
 0x1dc   :  { %715 = vmatprep.subr.bf16.mxu0 %v1625_v13  ;;  %756 = vmatprep.subr.bf16.mxu1 %v1629_v15 }
 0x1df   :  { %716 = vmatpush1.bf16.msra.mxu0 %v1623_v10  ;;  %757 = vmatpush1.bf16.msra.mxu1 %v1627_v14 }
 0x1e0   :  { %717 = vmatprep.subr.bf16.mxu0 %v1633_v5  ;;  %758 = vmatprep.subr.bf16.mxu1 %v1637_v17 }
 0x1e3   :  { %718 = vmatpush1.bf16.msra.mxu0 %v1631_v3  ;;  %759 = vmatpush1.bf16.msra.mxu1 %v1635_v11 }
 0x1e4   :  { %719 = vmatprep.subr.bf16.mxu0 %v1641_v18  ;;  %760 = vmatprep.subr.bf16.mxu1 %v1645_v9 }
 0x1e7   :  { %720 = vmatpush1.bf16.msra.mxu0 %v1639_v12  ;;  %761 = vmatpush1.bf16.msra.mxu1 %v1643_v7 }
 0x1e8   :  { %721 = vmatprep.subr.bf16.mxu0 %v1649_v19  ;;  %762 = vmatprep.subr.bf16.mxu1 %v1862_v26 }
 0x1eb   :  { %722 = vmatpush1.bf16.msra.mxu0 %v1863_v27  ;;  %763 = vmatpush1.bf16.msra.mxu1 %v1864_v29 }
 0x1ec   :  { %723 = vmatprep.subr.bf16.mxu0 %v1865_v30  ;;  %764 = vmatprep.subr.bf16.mxu1 %v1866_v31 }
 0x1ef   :  { %724 = vmatpush1.bf16.msra.mxu0 %v1867_v32  ;;  %765 = vmatpush1.bf16.msra.mxu1 %v1868_v33 }
 0x1f0   :  { %725 = vmatprep.subr.bf16.mxu0 %v1869_v34  ;;  %766 = vmatprep.subr.bf16.mxu1 %v1870_v35 }
 0x1f3   :  { %726 = vmatpush1.bf16.msra.mxu0 %v1871_v36  ;;  %767 = vmatpush1.bf16.msra.mxu1 %v1872_v37 }
 0x1f4   :  { %727 = vmatprep.subr.bf16.mxu0 %v1873_v38  ;;  %768 = vmatprep.subr.bf16.mxu1 %v1874_v39 }
 0x1f7   :  { %728 = vmatpush1.bf16.msra.mxu0 %v1875_v40  ;;  %769 = vmatpush1.bf16.msra.mxu1 %v1876_v41 }
 0x1fa   :  { %730 = vmatmul.mubr.bf16.vlgmr.msra.gmra.mrb[4].mxu0 %v1877_v43  ;;  %771 = vmatmul.mubr.bf16.vlgmr.msra.gmra.mrb[4].mxu1 %v1877_v43 }
 0x2cd   :  { %v1751_v44 = vpop.f32.mrb[4].mxu0  ;;  %v1753_v45 = vpop.f32.mrb[4].mxu1 }
 0x2ce   :  { %v781_v46 = vrot.slane %v1751_v44, 4  ;;  %v809_v47 = vmul.f32 %v1751_v44, %v1751_v44  ;;  %v793_v48 = vrot.slane %v1753_v45, 4  ;;  %v811_v49 = vmul.f32 %v1753_v45, %v1753_v45  ;;  %v1761_v50 = vpop.f32.mrb[5].mxu0  ;;  %v1763_v52 = vpop.f32.mrb[5].mxu1 }
 0x2cf   :  { %v787_v56 = vrot.slane %v1761_v50, 4  ;;  %v810_v57 = vmul.f32 %v1761_v50, %v1761_v50  ;;  %v799_v58 = vrot.slane %v1763_v52, 4  ;;  %v812_v59 = vmul.f32 %v1763_v52, %v1763_v52  ;;  %v735_v60 = vpop.f32.mrb[6].mxu0  ;;  %v776_v61 = vpop.f32.mrb[6].mxu1 }
 0x2d0   :  { %v782_v62 = vadd.f32 %v781_v46, %v1751_v44  ;;  %v813_v63 = vrot.slane %v809_v47, 4  ;;  %v794_v0 = vadd.f32 %v793_v48, %v1753_v45  ;;  %v825_v1 = vrot.slane %v811_v49, 4  ;;  %v736_v2 = vpop.f32.mrb[7].mxu0  ;;  %v777_v4 = vpop.f32.mrb[7].mxu1 }
 0x2d1   :  { %v788_v6 = vadd.f32 %v787_v56, %v1761_v50  ;;  %v819_v8 = vrot.slane %v810_v57, 4  ;;  %v800_v10 = vadd.f32 %v799_v58, %v1763_v52  ;;  %v831_v13 = vrot.slane %v812_v59, 4 }
 0x2d2   :  { %v783_v14 = vrot.slane %v782_v62, 2  ;;  %v814_v15 = vadd.f32 %v813_v63, %v809_v47  ;;  %v795_v3 = vrot.slane %v794_v0, 2  ;;  %v826_v5 = vadd.f32 %v825_v1, %v811_v49 }
 0x2d3   :  { %v789_v11 = vrot.slane %v788_v6, 2  ;;  %v820_v17 = vadd.f32 %v819_v8, %v810_v57  ;;  %v801_v12 = vrot.slane %v800_v10, 2  ;;  %v832_v18 = vadd.f32 %v831_v13, %v812_v59 }
 0x2d4   :  { %v784_v7 = vadd.f32 %v783_v14, %v782_v62  ;;  %v815_v9 = vrot.slane %v814_v15, 2  ;;  %v796_v19 = vadd.f32 %v795_v3, %v794_v0  ;;  %v827_v28 = vrot.slane %v826_v5, 2 }
 0x2d5   :  { %v790_v54 = vadd.f32 %v789_v11, %v788_v6  ;;  %v821_v53 = vrot.slane %v820_v17, 2  ;;  %v802_v51 = vadd.f32 %v801_v12, %v800_v10  ;;  %v833_v42 = vrot.slane %v832_v18, 2  ;;  %v1878_v12 = vld [vmem:[#allocation25_spill] sm:$0xff] }
 0x2d6   :  { %v785_v25 = vrot.slane %v784_v7, 1  ;;  %v816_v16 = vadd.f32 %v815_v9, %v814_v15  ;;  %v797_v22 = vrot.slane %v796_v19, 1  ;;  %v828_v20 = vadd.f32 %v827_v28, %v826_v5 }
 0x2d7   :  { %v791_v55 = vrot.slane %v790_v54, 1  ;;  %v822_v24 = vadd.f32 %v821_v53, %v820_v17  ;;  %v803_v23 = vrot.slane %v802_v51, 1  ;;  %v834_v21 = vadd.f32 %v833_v42, %v832_v18  ;;  %v1879_v53 = vld [vmem:[#allocation26_spill] sm:$0xff]  ;;  %v1880_v42 = vld [vmem:[#allocation27_spill] sm:$0xff] }
 0x2d8   :  { %v786_v26 = vadd.f32 %v785_v25, %v784_v7  ;;  %v817_v27 = vrot.slane %v816_v16, 1  ;;  %v798_v29 = vadd.f32 %v797_v22, %v796_v19  ;;  %v829_v30 = vrot.slane %v828_v20, 1  ;;  %v779_v19 = vld [vmem:[%s1825_s5] sm:$0xf] }
 0x2d9   :  { %v792_v31 = vadd.f32 %v791_v55, %v790_v54  ;;  %v823_v32 = vrot.slane %v822_v24, 1  ;;  %v804_v33 = vadd.f32 %v803_v23, %v802_v51  ;;  %v835_v34 = vrot.slane %v834_v21, 1 }
 0x2da   :  { %v805_v35 = vmul.f32 0.125, %v786_v26  ;;  %v818_v36 = vadd.f32 %v817_v27, %v816_v16  ;;  %v807_v37 = vmul.f32 0.125, %v798_v29  ;;  %v830_v38 = vadd.f32 %v829_v30, %v828_v20  ;;  %v1881_v16 = vld [vmem:[#allocation28_spill] sm:$0xff]  ;;  %v1882_v20 = vld [vmem:[#allocation29_spill] sm:$0xff] }
 0x2db   :  { %v806_v39 = vmul.f32 0.125, %v792_v31  ;;  %v824_v40 = vadd.f32 %v823_v32, %v822_v24  ;;  %v808_v41 = vmul.f32 0.125, %v804_v33  ;;  %v836_v43 = vadd.f32 %v835_v34, %v834_v21 }
 0x2dc   :  { %v837_v46 = vmul.f32 0.125, %v818_v36  ;;  %v841_v47 = vmul.f32 %v805_v35, %v805_v35  ;;  %v839_v48 = vmul.f32 0.125, %v830_v38  ;;  %v843_v49 = vmul.f32 %v807_v37, %v807_v37 }
 0x2dd   :  { %v838_v56 = vmul.f32 0.125, %v824_v40  ;;  %v842_v57 = vmul.f32 %v806_v39, %v806_v39  ;;  %v840_v58 = vmul.f32 0.125, %v836_v43  ;;  %v844_v59 = vmul.f32 %v808_v41, %v808_v41 }
 0x2de   :  { %v845_v60 = vsub.f32 %v837_v46, %v841_v47  ;;  %v847_v61 = vsub.f32 %v839_v48, %v843_v49 }
 0x2df   :  { %v846_v62 = vsub.f32 %v838_v56, %v842_v57  ;;  %v848_v63 = vsub.f32 %v840_v58, %v844_v59 }
 0x2e0   :  { %v849_v0 = vmax.f32 %v845_v60, 0.0  ;;  %v851_v1 = vmax.f32 %v847_v61, 0.0 }
 0x2e1   :  { %v850_v2 = vmax.f32 %v846_v62, 0.0  ;;  %v852_v4 = vmax.f32 %v848_v63, 0.0 }
 0x2e2   :  { %v853_v6 = vadd.f32 1e-05, %v849_v0  ;;  %v855_v8 = vadd.f32 1e-05, %v851_v1 }
 0x2e3   :  { %v854_v10 = vadd.f32 1e-05, %v850_v2  ;;  %v856_v13 = vadd.f32 1e-05, %v852_v4 }
 0x2e4   :  { %1253 = vrsqrt.f32 %v853_v6 }
 0x2e5   :  { %1255 = vrsqrt.f32 %v855_v8 }
 0x2e6   :  { %1257 = vrsqrt.f32 %v854_v10 }
 0x2e7   :  { %1259 = vrsqrt.f32 %v856_v13 }
 0x2ee   :  { %v1254_v14 = vpop.eup %1253 }
 0x2ef   :  { %v1256_v15 = vpop.eup %1255 }
 0x2f0   :  { %v1258_v3 = vpop.eup %1257 }
 0x2f1   :  { %v1260_v5 = vpop.eup %1259  ;;  %v865_v11 = vcombine.low %v1254_v14, %v1258_v3 }
 0x2f2   :  { %v866_v17 = vcombine.low %v1256_v15, %v1260_v5 }
 0x2f3   :  { %v873_v18 = vrot.slane %v865_v11, %v1878_v12 }
 0x2f4   :  { %v880_v7 = vrot.slane %v866_v17, %v1878_v12 }
 0x2f6   :  { %v881_v9 = vcombine.low %v873_v18, %v880_v7 }
 0x2f8   :  { %v888_v28 = vrot.slane %v881_v9, %v1878_v12 }
 0x2fa   :  { %v890_v54 = vmul.f32 %v888_v28, %v779_v19 }
 0x2fc   :  { %v895_v51 = vrot.slane %v890_v54, %v1879_v53  ;;  %v899_v25 = vrot.slane %v890_v54, %v1880_v42  ;;  %v903_v22 = vrot.slane %v890_v54, %v1881_v16  ;;  %v907_v55 = vrot.slane %v890_v54, %v1882_v20 }
 0x2fe   :  { %v912_v24 = vmul.f32 %v895_v51, %v805_v35  ;;  %v913_v23 = vmul.f32 %v899_v25, %v806_v39  ;;  %v914_v21 = vmul.f32 %v903_v22, %v807_v37  ;;  %v915_v26 = vmul.f32 %v907_v55, %v808_v41  ;;  %v780_v35 = vld [vmem:[%s1826_s6] sm:$0xf] }
 0x2ff   :  { %v946_v27 = vmul.f32 %v895_v51, %v1751_v44  ;;  %v947_v29 = vmul.f32 %v899_v25, %v1761_v50  ;;  %v948_v30 = vmul.f32 %v903_v22, %v1753_v45  ;;  %v949_v31 = vmul.f32 %v907_v55, %v1763_v52 }
 0x300   :  { %v920_v32 = vcombine.low %v912_v24, %v913_v23  ;;  %v921_v33 = vcombine.low %v914_v21, %v915_v26 }
 0x302   :  { %v928_v34 = vrot.slane %v920_v32, %v1878_v12  ;;  %v935_v36 = vrot.slane %v921_v33, %v1878_v12 }
 0x304   :  { %v936_v38 = vcombine.low %v928_v34, %v935_v36 }
 0x306   :  { %v943_v37 = vrot.slane %v936_v38, %v1878_v12 }
 0x308   :  { %v945_v44 = vsub.f32 %v780_v35, %v943_v37 }
 0x30a   :  { %v954_v50 = vrot.slane %v945_v44, %v1879_v53  ;;  %v958_v45 = vrot.slane %v945_v44, %v1880_v42  ;;  %v962_v52 = vrot.slane %v945_v44, %v1881_v16  ;;  %v966_v39 = vrot.slane %v945_v44, %v1882_v20 }
 0x30c   :  { %v971_v40 = vadd.f32 %v954_v50, %v946_v27  ;;  %v972_v41 = vadd.f32 %v958_v45, %v947_v29  ;;  %v973_v43 = vadd.f32 %v962_v52, %v948_v30  ;;  %v974_v46 = vadd.f32 %v966_v39, %v949_v31 }
 0x30e   :  { %v975_v47 = vmax.f32 %v971_v40, 0.0  ;;  %v976_v48 = vmax.f32 %v972_v41, 0.0  ;;  %v977_v49 = vmax.f32 %v973_v43, 0.0  ;;  %v978_v56 = vmax.f32 %v974_v46, 0.0 }
 0x310   :  { %v1799_v57 = vpack.c.bf16 %v975_v47, %v975_v47  ;;  %v980_v58 = vpack.c.bf16 %v976_v48, %v976_v48  ;;  %v1801_v59 = vpack.c.bf16 %v977_v49, %v977_v49  ;;  %v982_v60 = vpack.c.bf16 %v978_v56, %v978_v56 }
 0x311   :  { %1359 = dma.done.wait [#allocation4 + $0x2], 4096 }
 0x312   :  { %1360 = vsyncadd [#allocation4 + $0x2], 4294963200  ;;  %1058 = vmatprep.mubr.bf16.mxu0 %v980_v58  ;;  %1098 = vmatprep.mubr.bf16.mxu1 %v982_v60  ;;  %v995_v61 = vld [vmem:[#allocation3 + $0x40] sm:$0xff]  ;;  %v996_v1 = vld [vmem:[#allocation3 + $0x48] sm:$0xff]  ;;  %s1381_s26 = smov [#allocation10]  }
 0x313   :  { %v1011_v62 = vld [vmem:[#allocation3 + $0xc0] sm:$0xff]  ;;  %1162 = vmatprep.subr.bf16.mxu0 %v995_v61  ;;  %v1012_v2 = vld [vmem:[#allocation3 + $0xc8] sm:$0xff]  ;;  %v997_v8 = vld [vmem:[#allocation3 + $0x50] sm:$0xff]  ;;  %s1114_s27 = sshll.u32 %s1381_s26, 4  ;;  %s1115_s27 = int_to_ptr.vmem [resolvable:$true] %s1114_s27 }
 0x314   :  { %v987_v63 = vld [vmem:[#allocation3] sm:$0xff]  ;;  %1184 = vmatprep.subr.bf16.mxu1 %v1011_v62  ;;  %v988_v4 = vld [vmem:[#allocation3 + $0x8] sm:$0xff]  ;;  %v1013_v10 = vld [vmem:[#allocation3 + $0xd0] sm:$0xff]  ;;  %s1329_s28 = scalar_lea.vmem %s1115_s27, 128  ;;  %p1334_p11 = scmp.lt.s32.totalorder %s1115_s27, %s1115_s27 }
 0x315   :  { %v1003_v0 = vld [vmem:[#allocation3 + $0x80] sm:$0xff]  ;;  %1163 = vmatpush3.bf16.msra.mxu0 %v987_v63  ;;  %v1004_v6 = vld [vmem:[#allocation3 + $0x88] sm:$0xff]  ;;  %v989_v13 = vld [vmem:[#allocation3 + $0x10] sm:$0xff]  ;;  %p1330_p10 = scmp.ne.s32.totalorder %s1115_s27, %s1329_s28  ;;  %p1335_p12 = scmp.lt.s32.totalorder %s1329_s28, %s1329_s28 }
 0x316   :  { %1185 = vmatpush3.bf16.msra.mxu1 %v1003_v0  ;;  %1164 = vmatprep.subr.bf16.mxu0 %v996_v1  ;;  %v1005_v14 = vld [vmem:[#allocation3 + $0x90] sm:$0xff]  ;;  %v998_v15 = vld [vmem:[#allocation3 + $0x58] sm:$0xff]  ;;  %v999_v17 = vld [vmem:[#allocation3 + $0x60] sm:$0xff] }
 0x317   :  { %1186 = vmatprep.subr.bf16.mxu1 %v1012_v2  ;;  %v1014_v3 = vld [vmem:[#allocation3 + $0xd8] sm:$0xff]  ;;  %v1015_v12 = vld [vmem:[#allocation3 + $0xe0] sm:$0xff]  ;;  %v1000_v9 = vld [vmem:[#allocation3 + $0x68] sm:$0xff]  ;;  %p1336_p13 = por %p1335_p12, %p1334_p11 }
 0x318   :  { %v990_v5 = vld [vmem:[#allocation3 + $0x18] sm:$0xff]  ;;  %v991_v18 = vld [vmem:[#allocation3 + $0x20] sm:$0xff]  ;;  %v1016_v19 = vld [vmem:[#allocation3 + $0xe8] sm:$0xff] }
 0x319   :  { %1165 = vmatpush3.bf16.msra.mxu0 %v988_v4  ;;  %v1006_v11 = vld [vmem:[#allocation3 + $0x98] sm:$0xff]  ;;  %v1007_v7 = vld [vmem:[#allocation3 + $0xa0] sm:$0xff]  ;;  %v992_v28 = vld [vmem:[#allocation3 + $0x28] sm:$0xff]  ;;  %p1337_p0 = pnand %p1336_p13, %p1330_p10 }
 0x31a   :  { %1187 = vmatpush3.bf16.msra.mxu1 %v1004_v6  ;;  %1166 = vmatprep.subr.bf16.mxu0 %v997_v8  ;;  %v1008_v54 = vld [vmem:[#allocation3 + $0xa8] sm:$0xff]  ;;  %v1001_v53 = vld [vmem:[#allocation3 + $0x70] sm:$0xff]  ;;  %v1002_v16 = vld [vmem:[#allocation3 + $0x78] sm:$0xff] }
 0x31b   :  { %1188 = vmatprep.subr.bf16.mxu1 %v1013_v10  ;;  %v1017_v51 = vld [vmem:[#allocation3 + $0xf0] sm:$0xff]  ;;  %v1018_v22 = vld [vmem:[#allocation3 + $0xf8] sm:$0xff]  ;;  %v1158_v21 = vld [vmem:[%s1828_s8] ss:$0 sm:$0xff] }
 0x31c   :  { %v993_v42 = vld [vmem:[#allocation3 + $0x30] sm:$0xff]  ;;  %v994_v20 = vld [vmem:[#allocation3 + $0x38] sm:$0xff] }
 0x31d   :  { %1167 = vmatpush3.bf16.msra.mxu0 %v989_v13  ;;  %v1009_v25 = vld [vmem:[#allocation3 + $0xb0] sm:$0xff]  ;;  %v1010_v55 = vld [vmem:[#allocation3 + $0xb8] sm:$0xff] }
 0x31e   :  { %1189 = vmatpush3.bf16.msra.mxu1 %v1005_v14  ;;  %1168 = vmatprep.subr.bf16.mxu0 %v998_v15 }
 0x31f   :  { %1190 = vmatprep.subr.bf16.mxu1 %v1014_v3 }
 0x321   :  { %1169 = vmatpush3.bf16.msra.mxu0 %v990_v5 }
 0x322   :  { %1191 = vmatpush3.bf16.msra.mxu1 %v1006_v11  ;;  %1170 = vmatprep.subr.bf16.mxu0 %v999_v17 }
 0x323   :  { %1192 = vmatprep.subr.bf16.mxu1 %v1015_v12 }
 0x325   :  { %1171 = vmatpush3.bf16.msra.mxu0 %v991_v18 }
 0x326   :  { %1193 = vmatpush3.bf16.msra.mxu1 %v1007_v7  ;;  %1172 = vmatprep.subr.bf16.mxu0 %v1000_v9 }
 0x327   :  { %1194 = vmatprep.subr.bf16.mxu1 %v1016_v19 }
 0x329   :  { %1173 = vmatpush3.bf16.msra.mxu0 %v992_v28 }
 0x32a   :  { %1195 = vmatpush3.bf16.msra.mxu1 %v1008_v54  ;;  %1174 = vmatprep.subr.bf16.mxu0 %v1001_v53 }
 0x32b   :  { %1196 = vmatprep.subr.bf16.mxu1 %v1017_v51 }
 0x32d   :  { %1175 = vmatpush3.bf16.msra.mxu0 %v993_v42 }
 0x32e   :  { %1197 = vmatpush3.bf16.msra.mxu1 %v1009_v25  ;;  %1176 = vmatprep.subr.bf16.mxu0 %v1002_v16 }
 0x32f   :  { %1198 = vmatprep.subr.bf16.mxu1 %v1018_v22 }
 0x331   :  { %1177 = vmatpush3.bf16.msra.mxu0 %v994_v20 }
 0x332   :  { %1199 = vmatpush3.bf16.msra.mxu1 %v1010_v55 }
 0x334   :  { %1059 = vmatmul.mubr.bf16.vlgmr.msra.gmra.mrb[8].mxu0 %v1799_v57 }
 0x335   :  { %1099 = vmatmul.mubr.bf16.vlgmr.msra.gmra.mrb[8].mxu1 %v1801_v59 }
 0x407   :  { %v1178_v24 = vpop.f32.mrb[8].mxu0 }
 0x408   :  { %v1200_v23 = vpop.f32.mrb[8].mxu1  ;;  %v1179_v26 = vpop.f32.mrb[9].mxu0 }
 0x409   :  { %v1201_v27 = vpop.f32.mrb[9].mxu1  ;;  %v1180_v29 = vadd.f32 %v1179_v26, %v1178_v24  ;;  %v1181_v31 = vpop.f32.mrb[10].mxu0 }
 0x40a   :  { %v1202_v30 = vadd.f32 %v1201_v27, %v1200_v23  ;;  %v1203_v32 = vpop.f32.mrb[10].mxu1  ;;  %v1182_v33 = vpop.f32.mrb[11].mxu0 }
 0x40b   :  { %v1204_v34 = vpop.f32.mrb[11].mxu1  ;;  %v1061_v36 = vadd.f32 %v1180_v29, %v1158_v21 }
 0x40d   :  { %v1101_v38 = vadd.f32 %v1202_v30, %v1061_v36 }
 0x40f   :  { %1261 = vtanh.f32 %v1101_v38 }
 0x419   :  { %v1262_v35 = vpop.eup %1261 }
 0x41a   :  { %1107 = vst [vmem:[#allocation10] sm:$0xff] %v1262_v35 }
 0x41b   :  { %1340 = shalt.err (!%p1337_p0)
}
 0x41c   :  { %s1341_s30 = scalar_lea.hbm %s1829_s9, 128 }
 0x41d   :  { %p1342_p1 = scmp.ne.s32.totalorder %s1829_s9, %s1341_s30  ;;  %p1345_p2 = scmp.lt.u32.totalorder %s1341_s30, %s1829_s9 }
 0x41f   :  { %p1347_p3 = pnand %p1345_p2, %p1342_p1 }
 0x421   :  { %1350 = shalt.err (!%p1347_p3)
}
 0x422   :  { %1117 = dma.vmem_to_hbm [thread:$0]  %s1115_s27, 128, %s1829_s9, [#allocation7]  }
 0x423   :  { %1361 = dma.done.wait [#allocation7], 128  }
 0x424   :  { %1362 = vsyncadd [#allocation7], 4294967168 }
 0x425   :  { %1121 = vsyncpa [#allocation6], 1 }
 0x426   :  { %1122 = vsyncpa [#allocation9], 1 }
 0x427   :  { %1123 = vsyncpa [#allocation7], 1 }
 0x428   :  { %1124 = vsyncmov [#allocation4] }
 0x42b   :  { %s1125_s15 = vpop.sfrf %1124 }
 0x42c   :  { %p1159_p4 = scmp.ne.s32.totalorder %s1125_s15, 0 }
 0x42e   :  { %1129 = shalt.err (%p1159_p4)  }
 0x42f   :  { %1131 = vsyncmov [#allocation4 + $0x1] }
 0x432   :  { %s1132_s16 = vpop.sfrf %1131 }
 0x433   :  { %p1160_p5 = scmp.ne.s32.totalorder %s1132_s16, 0 }
 0x435   :  { %1136 = shalt.err (%p1160_p5)  }
 0x436   :  { %1138 = vsyncmov [#allocation4 + $0x2] }
 0x439   :  { %s1139_s17 = vpop.sfrf %1138 }
 0x43a   :  { %p1161_p6 = scmp.ne.s32.totalorder %s1139_s17, 0 }
 0x43c   :  { %1143 = shalt.err (%p1161_p6)  }

</bundles_post_ra>
